<compile_context>
chip_gen: v7x
topology: tpu7x:2x2x1
jax: 0.10.0
libtpu: 0.0.40
codegen_flags: <defaults>
</compile_context>

<pallas_src>
import math
import functools

import jax
import jax.numpy as jnp
from jax.experimental import pallas as pl
from jax.experimental.pallas import tpu as pltpu

K = 5        # kernel size
PAD = 2      # padding (= K // 2)

# Nonzero taps of the PixelCNN type-'A' 5x5 mask (center and everything after zeroed,
# rows below the center zeroed): kh<2 -> all kw; kh==2 -> kw<2.  12 taps total.
TAPS_A = tuple(
    (kh, kw)
    for kh in range(K)
    for kw in range(K)
    if (kh < K // 2) or (kh == K // 2 and kw < K // 2)
)


def _ctx_pred_kernel(x_ref, w_ref, b_ref, o_ref, *, block_h, out_w, c_in):
    """One grid step: TH output rows of the masked 5x5 conv as a single MXU matmul.

    x_ref: (Hp, Wp, Cin)          full padded image of the current batch element
    w_ref: (n_taps*Cin, Cout)     dense weight slab (unmasked taps only, tap-major)
    b_ref: (1, Cout)              bias (f32)
    o_ref: (TH*W, Cout)           TH flattened output rows of h-block j
    """
    j = pl.program_id(1)
    row0 = pl.multiple_of(j * block_h, block_h)

    # im2col: one (TH*W, Cin) strip per nonzero tap, concatenated along the
    # contraction axis -> (TH*W, n_taps*Cin).
    pieces = []
    for kh, kw in TAPS_A:
        p = x_ref[pl.ds(row0 + kh, block_h), kw:kw + out_w, :]   # (TH, W, Cin)
        pieces.append(p.reshape(block_h * out_w, c_in))
    patch = jnp.concatenate(pieces, axis=-1)                      # (TH*W, n_taps*Cin)

    acc = jnp.dot(patch, w_ref[...], preferred_element_type=jnp.float32)
    acc = acc + b_ref[...]                                        # (1, Cout) broadcasts
    o_ref[...] = acc.astype(o_ref.dtype)


def context_prediction(x_nchw, weight_oihw, bias, *, block_h=None, compute_dtype=None):
    """Forward of ContextPrediction: conv2d(x, weight * mask_A, bias, stride=1, pad=2).

    The type-'A' mask is applied implicitly by only ever using the 12 unmasked taps
    (their mask values are all 1, so using the raw weight for them is exact).

    x_nchw:      (N, Cin, H, W)     float32
    weight_oihw: (Cout, Cin, K, K)  float32   (Cout = 2 * Cin in the module)
    bias:        (Cout,)            float32
    returns:     (N, Cout, H, W)    x.dtype   (NCHW, matching PyTorch)
    """
    n, c_in, h, w = x_nchw.shape
    c_out = weight_oihw.shape[0]
    n_taps = len(TAPS_A)
    cdt = x_nchw.dtype if compute_dtype is None else compute_dtype

    # --- choose the number of output rows per grid step (fat matmul, bounded VMEM) ---
    if block_h is None:
        block_h = 1
        for cand in range(h, 0, -1):
            if h % cand == 0 and cand * w <= 2048:
                block_h = cand
                break
    assert h % block_h == 0, (h, block_h)

    # --- glue: dense weight slab over the 12 unmasked taps, tap-major along K-dim ---
    tap_flat = jnp.array([kh * K + kw for kh, kw in TAPS_A], dtype=jnp.int32)
    w_taps = jnp.transpose(weight_oihw, (2, 3, 1, 0)).reshape(K * K, c_in, c_out)
    w_slab = w_taps[tap_flat].reshape(n_taps * c_in, c_out).astype(cdt)

    # --- glue: NHWC zero-padded input, f32 bias row ---
    x_nhwc = jnp.transpose(x_nchw, (0, 2, 3, 1))
    x_pad = jnp.pad(x_nhwc, ((0, 0), (PAD, PAD), (PAD, PAD), (0, 0))).astype(cdt)
    hp, wp = h + 2 * PAD, w + 2 * PAD
    b2 = bias.reshape(1, c_out).astype(jnp.float32)

    kernel = functools.partial(_ctx_pred_kernel, block_h=block_h, out_w=w, c_in=c_in)

    out_flat = pl.pallas_call(
        kernel,
        out_shape=jax.ShapeDtypeStruct((n, h * w, c_out), x_nchw.dtype),
        grid=(n, h // block_h),
        in_specs=[
            # Full padded image per batch element, resident across the h-block axis.
            pl.BlockSpec((None, hp, wp, c_in), lambda i, j: (i, 0, 0, 0)),
            # Single dense weight slab and bias, resident across the whole grid.
            pl.BlockSpec((n_taps * c_in, c_out), lambda i, j: (0, 0)),
            pl.BlockSpec((1, c_out), lambda i, j: (0, 0)),
        ],
        # Flattened (H*W, Cout) output; block j covers rows [j*TH*W, (j+1)*TH*W).
        out_specs=pl.BlockSpec((None, block_h * w, c_out), lambda i, j: (i, j, 0)),
        compiler_params=pltpu.CompilerParams(
            dimension_semantics=("parallel", "parallel")),
    )(x_pad, w_slab, b2)

    out_nhwc = out_flat.reshape(n, h, w, c_out)
    return jnp.transpose(out_nhwc, (0, 3, 1, 2))


# ----------------------------- reference & self-test -----------------------------

def _make_mask_a(c_out, c_in):
    """PixelCNN type-'A' mask for a 5x5 kernel."""
    m = jnp.ones((c_out, c_in, K, K), jnp.float32)
    m = m.at[:, :, K // 2, K // 2:].set(0.0)
    m = m.at[:, :, K // 2 + 1:, :].set(0.0)
    return m


def _reference(x_nchw, weight_oihw, bias):
    wm = weight_oihw * _make_mask_a(weight_oihw.shape[0], weight_oihw.shape[1])
    out = jax.lax.conv_general_dilated(
        x_nchw, wm, window_strides=(1, 1), padding=[(PAD, PAD), (PAD, PAD)],
        dimension_numbers=("NCHW", "OIHW", "NCHW"))
    return out + bias[None, :, None, None]


if __name__ == "__main__":
    # Small shapes consistent with the module (channel_in=C -> out 2C, 5x5 conv).
    N, C_IN, H, W = 2, 4, 16, 16
    C_OUT = 2 * C_IN

    key = jax.random.PRNGKey(0)
    kx, kw_, kb = jax.random.split(key, 3)

    fan_in = C_IN * K * K
    bound = 1.0 / math.sqrt(fan_in)
    x = jax.random.normal(kx, (N, C_IN, H, W), jnp.float32)
    weight = jax.random.uniform(kw_, (C_OUT, C_IN, K, K), jnp.float32, -bound, bound)
    bias = jax.random.uniform(kb, (C_OUT,), jnp.float32, -bound, bound)

    ref = jax.block_until_ready(_reference(x, weight, bias))

    # f32, two h-blocks per image (exercises the dynamic row-window path).
    out = jax.block_until_ready(context_prediction(x, weight, bias, block_h=8))
    assert out.shape == (N, C_OUT, H, W), out.shape
    assert jnp.allclose(out, ref, atol=1e-4, rtol=1e-4), \
        float(jnp.max(jnp.abs(out - ref)))

    # f32, default blocking (whole image per grid step).
    out2 = jax.block_until_ready(context_prediction(x, weight, bias))
    assert jnp.allclose(out2, ref, atol=1e-4, rtol=1e-4), \
        float(jnp.max(jnp.abs(out2 - ref)))

    # bf16 MXU inputs, f32 accumulation/output (v6e/v7x memory-side optimization).
    out_bf16 = jax.block_until_ready(
        context_prediction(x, weight, bias, block_h=8, compute_dtype=jnp.bfloat16))
    assert jnp.allclose(out_bf16, ref, atol=5e-2, rtol=5e-2), \
        float(jnp.max(jnp.abs(out_bf16 - ref)))

    print("KERNEL_OK")
</pallas_src>

<mosaic_0001>
module attributes {stable_mosaic.version = 11 : i64} {
  func.func @_ctx_pred_kernel(%arg0: i32, %arg1: i32, %arg2: memref<1x20x20x4xf32, #tpu.memory_space<vmem>>, %arg3: memref<48x8xf32, #tpu.memory_space<vmem>>, %arg4: memref<1x8xf32, #tpu.memory_space<vmem>>, %arg5: memref<1x128x8xf32, #tpu.memory_space<vmem>>) attributes {dimension_semantics = [#tpu.dimension_semantics<parallel>, #tpu.dimension_semantics<parallel>], iteration_bounds = array<i64: 2, 2>, scalar_prefetch = 0 : i64, scratch_operands = 0 : i64, tpu.core_type = #tpu.core_type<tc>, window_params = [{transform_indices = @transform_0, window_bounds = array<i64: 1, 20, 20, 4>}, {pipeline_mode = #tpu.pipeline_mode<synchronous>, transform_indices = @transform_1, window_bounds = array<i64: 48, 8>}, {pipeline_mode = #tpu.pipeline_mode<synchronous>, transform_indices = @transform_2, window_bounds = array<i64: 1, 8>}, {transform_indices = @transform_3, window_bounds = array<i64: 1, 128, 8>}]} {
    %c8_i32 = arith.constant 8 : i32
    %0 = arith.muli %arg1, %c8_i32 : i32
    %1 = tpu.assume_multiple %0, 8 : i32
    %c0_i32 = arith.constant 0 : i32
    %2 = arith.addi %1, %c0_i32 : i32
    %c0 = arith.constant 0 : index
    %3 = arith.index_cast %2 : i32 to index
    %c0_0 = arith.constant 0 : index
    %c0_1 = arith.constant 0 : index
    %4 = vector.load %arg2[%c0, %3, %c0_0, %c0_1] : memref<1x20x20x4xf32, #tpu.memory_space<vmem>>, vector<1x8x16x4xf32>
    %5 = vector.shape_cast %4 : vector<1x8x16x4xf32> to vector<8x16x4xf32>
    %6 = vector.shape_cast %5 : vector<8x16x4xf32> to vector<128x4xf32>
    %c0_i32_2 = arith.constant 0 : i32
    %7 = arith.addi %1, %c0_i32_2 : i32
    %c0_3 = arith.constant 0 : index
    %8 = arith.index_cast %7 : i32 to index
    %c1 = arith.constant 1 : index
    %c0_4 = arith.constant 0 : index
    %9 = vector.load %arg2[%c0_3, %8, %c1, %c0_4] : memref<1x20x20x4xf32, #tpu.memory_space<vmem>>, vector<1x8x16x4xf32>
    %10 = vector.shape_cast %9 : vector<1x8x16x4xf32> to vector<8x16x4xf32>
    %11 = vector.shape_cast %10 : vector<8x16x4xf32> to vector<128x4xf32>
    %c0_i32_5 = arith.constant 0 : i32
    %12 = arith.addi %1, %c0_i32_5 : i32
    %c0_6 = arith.constant 0 : index
    %13 = arith.index_cast %12 : i32 to index
    %c2 = arith.constant 2 : index
    %c0_7 = arith.constant 0 : index
    %14 = vector.load %arg2[%c0_6, %13, %c2, %c0_7] : memref<1x20x20x4xf32, #tpu.memory_space<vmem>>, vector<1x8x16x4xf32>
    %15 = vector.shape_cast %14 : vector<1x8x16x4xf32> to vector<8x16x4xf32>
    %16 = vector.shape_cast %15 : vector<8x16x4xf32> to vector<128x4xf32>
    %c0_i32_8 = arith.constant 0 : i32
    %17 = arith.addi %1, %c0_i32_8 : i32
    %c0_9 = arith.constant 0 : index
    %18 = arith.index_cast %17 : i32 to index
    %c3 = arith.constant 3 : index
    %c0_10 = arith.constant 0 : index
    %19 = vector.load %arg2[%c0_9, %18, %c3, %c0_10] : memref<1x20x20x4xf32, #tpu.memory_space<vmem>>, vector<1x8x16x4xf32>
    %20 = vector.shape_cast %19 : vector<1x8x16x4xf32> to vector<8x16x4xf32>
    %21 = vector.shape_cast %20 : vector<8x16x4xf32> to vector<128x4xf32>
    %c0_i32_11 = arith.constant 0 : i32
    %22 = arith.addi %1, %c0_i32_11 : i32
    %c0_12 = arith.constant 0 : index
    %23 = arith.index_cast %22 : i32 to index
    %c4 = arith.constant 4 : index
    %c0_13 = arith.constant 0 : index
    %24 = vector.load %arg2[%c0_12, %23, %c4, %c0_13] : memref<1x20x20x4xf32, #tpu.memory_space<vmem>>, vector<1x8x16x4xf32>
    %25 = vector.shape_cast %24 : vector<1x8x16x4xf32> to vector<8x16x4xf32>
    %26 = vector.shape_cast %25 : vector<8x16x4xf32> to vector<128x4xf32>
    %c1_i32 = arith.constant 1 : i32
    %27 = arith.addi %1, %c1_i32 : i32
    %c0_14 = arith.constant 0 : index
    %28 = arith.index_cast %27 : i32 to index
    %c0_15 = arith.constant 0 : index
    %c0_16 = arith.constant 0 : index
    %29 = vector.load %arg2[%c0_14, %28, %c0_15, %c0_16] : memref<1x20x20x4xf32, #tpu.memory_space<vmem>>, vector<1x8x16x4xf32>
    %30 = vector.shape_cast %29 : vector<1x8x16x4xf32> to vector<8x16x4xf32>
    %31 = vector.shape_cast %30 : vector<8x16x4xf32> to vector<128x4xf32>
    %c1_i32_17 = arith.constant 1 : i32
    %32 = arith.addi %1, %c1_i32_17 : i32
    %c0_18 = arith.constant 0 : index
    %33 = arith.index_cast %32 : i32 to index
    %c1_19 = arith.constant 1 : index
    %c0_20 = arith.constant 0 : index
    %34 = vector.load %arg2[%c0_18, %33, %c1_19, %c0_20] : memref<1x20x20x4xf32, #tpu.memory_space<vmem>>, vector<1x8x16x4xf32>
    %35 = vector.shape_cast %34 : vector<1x8x16x4xf32> to vector<8x16x4xf32>
    %36 = vector.shape_cast %35 : vector<8x16x4xf32> to vector<128x4xf32>
    %c1_i32_21 = arith.constant 1 : i32
    %37 = arith.addi %1, %c1_i32_21 : i32
    %c0_22 = arith.constant 0 : index
    %38 = arith.index_cast %37 : i32 to index
    %c2_23 = arith.constant 2 : index
    %c0_24 = arith.constant 0 : index
    %39 = vector.load %arg2[%c0_22, %38, %c2_23, %c0_24] : memref<1x20x20x4xf32, #tpu.memory_space<vmem>>, vector<1x8x16x4xf32>
    %40 = vector.shape_cast %39 : vector<1x8x16x4xf32> to vector<8x16x4xf32>
    %41 = vector.shape_cast %40 : vector<8x16x4xf32> to vector<128x4xf32>
    %c1_i32_25 = arith.constant 1 : i32
    %42 = arith.addi %1, %c1_i32_25 : i32
    %c0_26 = arith.constant 0 : index
    %43 = arith.index_cast %42 : i32 to index
    %c3_27 = arith.constant 3 : index
    %c0_28 = arith.constant 0 : index
    %44 = vector.load %arg2[%c0_26, %43, %c3_27, %c0_28] : memref<1x20x20x4xf32, #tpu.memory_space<vmem>>, vector<1x8x16x4xf32>
    %45 = vector.shape_cast %44 : vector<1x8x16x4xf32> to vector<8x16x4xf32>
    %46 = vector.shape_cast %45 : vector<8x16x4xf32> to vector<128x4xf32>
    %c1_i32_29 = arith.constant 1 : i32
    %47 = arith.addi %1, %c1_i32_29 : i32
    %c0_30 = arith.constant 0 : index
    %48 = arith.index_cast %47 : i32 to index
    %c4_31 = arith.constant 4 : index
    %c0_32 = arith.constant 0 : index
    %49 = vector.load %arg2[%c0_30, %48, %c4_31, %c0_32] : memref<1x20x20x4xf32, #tpu.memory_space<vmem>>, vector<1x8x16x4xf32>
    %50 = vector.shape_cast %49 : vector<1x8x16x4xf32> to vector<8x16x4xf32>
    %51 = vector.shape_cast %50 : vector<8x16x4xf32> to vector<128x4xf32>
    %c2_i32 = arith.constant 2 : i32
    %52 = arith.addi %1, %c2_i32 : i32
    %c0_33 = arith.constant 0 : index
    %53 = arith.index_cast %52 : i32 to index
    %c0_34 = arith.constant 0 : index
    %c0_35 = arith.constant 0 : index
    %54 = vector.load %arg2[%c0_33, %53, %c0_34, %c0_35] : memref<1x20x20x4xf32, #tpu.memory_space<vmem>>, vector<1x8x16x4xf32>
    %55 = vector.shape_cast %54 : vector<1x8x16x4xf32> to vector<8x16x4xf32>
    %56 = vector.shape_cast %55 : vector<8x16x4xf32> to vector<128x4xf32>
    %c2_i32_36 = arith.constant 2 : i32
    %57 = arith.addi %1, %c2_i32_36 : i32
    %c0_37 = arith.constant 0 : index
    %58 = arith.index_cast %57 : i32 to index
    %c1_38 = arith.constant 1 : index
    %c0_39 = arith.constant 0 : index
    %59 = vector.load %arg2[%c0_37, %58, %c1_38, %c0_39] : memref<1x20x20x4xf32, #tpu.memory_space<vmem>>, vector<1x8x16x4xf32>
    %60 = vector.shape_cast %59 : vector<1x8x16x4xf32> to vector<8x16x4xf32>
    %61 = vector.shape_cast %60 : vector<8x16x4xf32> to vector<128x4xf32>
    %62 = tpu.concatenate %6, %11, %16, %21, %26, %31, %36, %41, %46, %51, %56, %61 in 1 : vector<128x4xf32>, vector<128x4xf32>, vector<128x4xf32>, vector<128x4xf32>, vector<128x4xf32>, vector<128x4xf32>, vector<128x4xf32>, vector<128x4xf32>, vector<128x4xf32>, vector<128x4xf32>, vector<128x4xf32>, vector<128x4xf32> -> vector<128x48xf32>
    %c0_40 = arith.constant 0 : index
    %c0_41 = arith.constant 0 : index
    %63 = vector.load %arg3[%c0_40, %c0_41] : memref<48x8xf32, #tpu.memory_space<vmem>>, vector<48x8xf32>
    %cst = arith.constant dense<0.000000e+00> : vector<128x8xf32>
    %64 = tpu.matmul %62, %63, %cst {dimension_numbers = #tpu.dot_dimension_numbers<[1], [0], [0], [1], [0, 0, 1, 1], [], []>} : vector<128x48xf32>, vector<48x8xf32>, vector<128x8xf32> -> vector<128x8xf32>
    %c0_42 = arith.constant 0 : index
    %c0_43 = arith.constant 0 : index
    %65 = vector.load %arg4[%c0_42, %c0_43] : memref<1x8xf32, #tpu.memory_space<vmem>>, vector<1x8xf32>
    %66 = vector.broadcast %65 : vector<1x8xf32> to vector<128x8xf32>
    %67 = arith.addf %64, %66 : vector<128x8xf32>
    %c0_44 = arith.constant 0 : index
    %c0_45 = arith.constant 0 : index
    %c0_46 = arith.constant 0 : index
    %68 = vector.load %arg5[%c0_44, %c0_45, %c0_46] : memref<1x128x8xf32, #tpu.memory_space<vmem>>, vector<1x128x8xf32>
    %69 = vector.shape_cast %68 : vector<1x128x8xf32> to vector<128x8xf32>
    %70 = vector.shape_cast %67 : vector<128x8xf32> to vector<1x128x8xf32>
    tpu.vector_store %arg5[%c0_44, %c0_45, %c0_46], %70 {strides = array<i32>} : memref<1x128x8xf32, #tpu.memory_space<vmem>>, vector<1x128x8xf32>,
    return
  }
  func.func @transform_0(%arg0: i32, %arg1: i32) -> (i32, i32, i32, i32) {
    %c0_i32 = arith.constant 0 : i32
    %c0_i32_0 = arith.constant 0 : i32
    %c0_i32_1 = arith.constant 0 : i32
    %c0_i32_2 = arith.constant 0 : i32
    return %arg0, %c0_i32, %c0_i32_0, %c0_i32_1 : i32, i32, i32, i32
  }
  func.func @transform_1(%arg0: i32, %arg1: i32) -> (i32, i32) {
    %c0_i32 = arith.constant 0 : i32
    %c0_i32_0 = arith.constant 0 : i32
    %c0_i32_1 = arith.constant 0 : i32
    return %c0_i32, %c0_i32_0 : i32, i32
  }
  func.func @transform_2(%arg0: i32, %arg1: i32) -> (i32, i32) {
    %c0_i32 = arith.constant 0 : i32
    %c0_i32_0 = arith.constant 0 : i32
    %c0_i32_1 = arith.constant 0 : i32
    return %c0_i32, %c0_i32_0 : i32, i32
  }
  func.func @transform_3(%arg0: i32, %arg1: i32) -> (i32, i32, i32) {
    %c0_i32 = arith.constant 0 : i32
    %c0_i32_0 = arith.constant 0 : i32
    return %arg0, %arg1, %c0_i32 : i32, i32, i32
  }
}

</mosaic_0001>

<bundles_post_ra>
// kernel: tpu_custom_call.1
= control target key start
LH: loop header
LB: loop body
LE: loop exit
PB: predicated region body
PF: predicated region fallthrough
CT: control target
= control target key end

     0   :  { %s1948_s12 = smov 0   ;;  %s1950_s13 = smov 0   ;;  %s2968_s0 = inlined_call_operand.vmem [shape: f32[2,20,20,4], index: 0, kind: input, shape index: {}]   ;;  %s2969_s1 = inlined_call_operand.vmem [shape: f32[48,8], index: 1, kind: input, shape index: {}]   ;;  %s2970_s2 = inlined_call_operand.vmem [shape: f32[1,8], index: 2, kind: input, shape index: {}]   ;;  %s2971_s3 = inlined_call_operand.vmem [shape: f32[2,256,8], index: 3, kind: output, shape index: {}]  }
   0x1   :  { %s1952_s14 = smov 0   ;;  %s1954_s15 = smov 0  }
   0x2   :  { %s1956_s16 = smov 0  }
   0x3 LB: > { %s22_s17 = sadd.s32 1, %s1907_s14  ;;  %s25_s18 = sadd.s32 1, %s1911_s15  ;;  %s1915_s16 = sphi %s1956_s16, %s13_s16   ;;  %s1911_s15 = sphi %s1954_s15, %s3048_s15   ;;  %s1907_s14 = sphi %s1952_s14, %s3047_s14   ;;  %s1903_s13 = sphi %s1950_s13, %s3046_s13   ;;  %s1899_s12 = sphi %s1948_s12, %s3045_s12  }
   0x4   : > { %p23_p0 = scmp.ge.s32.totalorder %s22_s17, 2  ;;  %p1607_p1 = scmp.ge.s32.totalorder %s1915_s16, 1 }
   0x5   : > { %p151_p2 = scmp.lt.s32.totalorder %s1915_s16, 5 }
   0x6   : > { %s3050_s17 = smov (%p23_p0, %s22_s17), 0  ;;  %s3052_s18 = smov (!%p23_p0, %s25_s18), %s1911_s15 }
   0x7   : > { %p152_p3 = pnand %p1607_p1, %p151_p2  ;;  %p27_p4 = scmp.ge.s32.totalorder %s3052_s18, 2 }
   0x9   : > { %s3054_s18 = smov (%p27_p4, %s3052_s18), 0  ;;  %155 = sbr.rel (%p152_p3) target bundleno = 704 (0x2c0), region = 32 }
  0x10   : > { %p179_p5 = scmp.lt.s32.totalorder %s1903_s13, 1  ;;  %s1613_s19 = smul.u32 192, %s1899_s12  ;;  %vm1099_vm0 = vcmask 31744   ;;  %vm1116_vm1 = vcmask 64512   ;;  %vm1133_vm2 = vcmask 97280   ;;  %vm1150_vm3 = vcmask 130048  }
  0x11   : > { %s1917_s25 = smov 4   ;;  %s1918_s26 = smov 8   ;;  %vm1167_vm4 = vcmask 162816   ;;  %vm1184_vm5 = vcmask 195584   ;;  %vm1201_vm6 = vcmask 228352   ;;  %vm1218_vm7 = vcmask 261120  }
  0x12   : > { %s3056_s13 = smov (!%p179_p5, %s1903_s13), 1  ;;  %s1919_s27 = smov 12   ;;  %vm1235_vm8 = vcmask 293888   ;;  %vm1252_vm9 = vcmask 326656   ;;  %vm1269_vm10 = vcmask 359424   ;;  %vm1299_vm11 = vcmask 392192  }
  0x13   : > { %s1825_s20 = smul.u32 480, %s3056_s13  ;;  %s1920_s28 = smov 16  }
  0x14   : > { %s1921_s29 = smov 20   ;;  %s1922_s30 = smov 24  }
  0x15   : > { %s183_s23 = scalar_lea.vmem %s2968_s0, %s1825_s20  ;;  %s1923_s4 = smov 28  }
  0x16   : > { %s1987_s24 = scalar_lea.vmem %s183_s23, %s1613_s19  ;;  %s1924_s5 = smov 32  }
  0x17   : > { %v1990_v0 = vld [vmem:[%s1987_s24 + $0x19] sm:$0xff]  ;;  %v213_v1 = vld [vmem:[%s1987_s24 + $0x1] sm:$0xff]  ;;  %v214_v3 = vld [vmem:[%s1987_s24 + $0x9] sm:$0xff]  ;;  %s1925_s6 = smov 36   ;;  %s1926_s7 = smov 40  }
  0x18   : > { %415 = vrot.lane.b32.xlu1 %v1990_v0, %s1917_s25  ;;  %411 = vrot.lane.b32.xlu0 %v213_v1, %s1917_s25  ;;  %v1995_v2 = vld [vmem:[%s1987_s24 + $0x21] sm:$0xff]  ;;  %v2000_v4 = vld [vmem:[%s1987_s24 + $0x39] sm:$0xff]  ;;  %s1927_s23 = smov 44  }
  0x19   : > { %v2003_v5 = vld [vmem:[%s1987_s24 + $0x31] sm:$0xff]  ;;  %v2011_v7 = vld [vmem:[%s1987_s24 + $0x49] sm:$0xff]  ;;  %v2017_v9 = vld [vmem:[%s1987_s24 + $0x61] sm:$0xff] }
  0x1a   : > { %v2008_v6 = vld [vmem:[%s1987_s24 + $0x51] sm:$0xff]  ;;  %v222_v8 = vld [vmem:[%s1987_s24 + $0x69] sm:$0xff]  ;;  %v2021_v10 = vld [vmem:[%s1987_s24 + $0x81] sm:$0xff] }
  0x1b   : > { %v2024_v11 = vld [vmem:[%s1987_s24 + $0x79] sm:$0xff]  ;;  %v2032_v13 = vld [vmem:[%s1987_s24 + $0x91] sm:$0xff]  ;;  %v2040_v15 = vld [vmem:[%s1987_s24 + $0xa9] sm:$0xff] }
  0x1c   : > { %417 = vrot.lane.b32.xlu1 %v1995_v2, %s1917_s25  ;;  %413 = vrot.lane.b32.xlu0 %v214_v3, %s1917_s25  ;;  %v2029_v12 = vld [vmem:[%s1987_s24 + $0x99] sm:$0xff]  ;;  %v2037_v14 = vld [vmem:[%s1987_s24 + $0xb1] sm:$0xff] }
  0x1d   : > { %v230_v16 = vld [vmem:[%s1987_s24 + $0xa] sm:$0xff]  ;;  %v229_v17 = vld [vmem:[%s1987_s24 + $0x2] sm:$0xff]  ;;  %v231_v19 = vld [vmem:[%s1987_s24 + $0x1a] sm:$0xff] }
  0x1e   : > { %v2049_v18 = vld [vmem:[%s1987_s24 + $0x22] sm:$0xff]  ;;  %v2056_v20 = vld [vmem:[%s1987_s24 + $0x3a] sm:$0xff]  ;;  %v2059_v21 = vld [vmem:[%s1987_s24 + $0x32] sm:$0xff] }
  0x1f   : > { %v2066_v22 = vld [vmem:[%s1987_s24 + $0x52] sm:$0xff]  ;;  %v2069_v23 = vld [vmem:[%s1987_s24 + $0x4a] sm:$0xff]  ;;  %v2077_v25 = vld [vmem:[%s1987_s24 + $0x62] sm:$0xff] }
  0x20   : > { %421 = vrot.lane.b32.xlu1 %v2000_v4, %s1917_s25  ;;  %419 = vrot.lane.b32.xlu0 %v2003_v5, %s1917_s25  ;;  %v238_v24 = vld [vmem:[%s1987_s24 + $0x6a] sm:$0xff]  ;;  %2979 = vst [vmem:[#allocation2_spill] sm:$0xff] %v2077_v25  ;;  %v240_v26 = vld [vmem:[%s1987_s24 + $0x82] sm:$0xff] }
  0x21   : > { %v239_v27 = vld [vmem:[%s1987_s24 + $0x7a] sm:$0xff]  ;;  %v245_v28 = vld [vmem:[%s1987_s24 + $0x3] sm:$0xff]  ;;  %v2088_v29 = vld [vmem:[%s1987_s24 + $0x92] sm:$0xff] }
  0x22   : > { %v246_v30 = vld [vmem:[%s1987_s24 + $0xb] sm:$0xff]  ;;  %v253_v31 = vld [vmem:[%s1987_s24 + $0x63] sm:$0xff]  ;;  %v1616_v36 = vld [vmem:[%s1987_s24 + $0x18] sm:$0xff] }
  0x23   : > { %v261_v32 = vld [vmem:[%s1987_s24 + $0x4] sm:$0xff]  ;;  %v262_v34 = vld [vmem:[%s1987_s24 + $0xc] sm:$0xff]  ;;  %v2111_v39 = vld [vmem:[%s1987_s24 + $0x78] sm:$0xff] }
  0x24   : > { %425 = vrot.lane.b32.xlu1 %v2008_v6, %s1917_s25  ;;  %423 = vrot.lane.b32.xlu0 %v2011_v7, %s1917_s25  ;;  %v254_v33 = vld [vmem:[%s1987_s24 + $0x6b] sm:$0xff]  ;;  %v1617_v38 = vld [vmem:[%s1987_s24 + $0x20] sm:$0xff] }
  0x25   : > { %v269_v35 = vld [vmem:[%s1987_s24 + $0x64] sm:$0xff]  ;;  %v270_v37 = vld [vmem:[%s1987_s24 + $0x6c] sm:$0xff]  ;;  %v247_v41 = vld [vmem:[%s1987_s24 + $0x1b] sm:$0xff] }
  0x26   : > { %v2117_v40 = vld [vmem:[%s1987_s24 + $0x80] sm:$0xff]  ;;  %v1618_v48 = vld [vmem:[%s1987_s24 + $0x30] sm:$0xff]  ;;  %v202_v57 = vld [vmem:[%s1987_s24 + $0x38] sm:$0xff] }
  0x27   : > { %v255_v42 = vld [vmem:[%s1987_s24 + $0x7b] sm:$0xff]  ;;  %v248_v43 = vld [vmem:[%s1987_s24 + $0x23] sm:$0xff]  ;;  %v1626_v53 = vld [vmem:[%s1987_s24 + $0x90] sm:$0xff] }
  0x28   : > { %429 = vrot.lane.b32.xlu1 %v222_v8, %s1917_s25  ;;  %427 = vrot.lane.b32.xlu0 %v2017_v9, %s1917_s25  ;;  %v263_v44 = vld [vmem:[%s1987_s24 + $0x1c] sm:$0xff]  ;;  %v264_v47 = vld [vmem:[%s1987_s24 + $0x24] sm:$0xff] }
  0x29   : > { %v256_v45 = vld [vmem:[%s1987_s24 + $0x83] sm:$0xff] }
  0x2a   : > { %v271_v46 = vld [vmem:[%s1987_s24 + $0x7c] sm:$0xff]  ;;  %v272_v49 = vld [vmem:[%s1987_s24 + $0x84] sm:$0xff] }
  0x2c   : > { %433 = vrot.lane.b32.xlu1 %v2021_v10, %s1917_s25  ;;  %431 = vrot.lane.b32.xlu0 %v2024_v11, %s1917_s25 }
  0x30   : > { %437 = vrot.lane.b32.xlu1 %v2029_v12, %s1917_s25  ;;  %435 = vrot.lane.b32.xlu0 %v2032_v13, %s1917_s25 }
  0x34   : > { %441 = vrot.lane.b32.xlu1 %v2037_v14, %s1917_s25  ;;  %439 = vrot.lane.b32.xlu0 %v2040_v15, %s1917_s25 }
  0x38   : > { %477 = vrot.lane.b32.xlu1 %v230_v16, %s1918_s26  ;;  %475 = vrot.lane.b32.xlu0 %v229_v17, %s1918_s26 }
  0x3c   : > { %481 = vrot.lane.b32.xlu1 %v2049_v18, %s1918_s26  ;;  %479 = vrot.lane.b32.xlu0 %v231_v19, %s1918_s26 }
  0x40   : > { %485 = vrot.lane.b32.xlu1 %v2056_v20, %s1918_s26  ;;  %483 = vrot.lane.b32.xlu0 %v2059_v21, %s1918_s26 }
  0x44   : > { %489 = vrot.lane.b32.xlu1 %v2066_v22, %s1918_s26  ;;  %487 = vrot.lane.b32.xlu0 %v2069_v23, %s1918_s26 }
  0x48   : > { %493 = vrot.lane.b32.xlu1 %v238_v24, %s1918_s26  ;;  %491 = vrot.lane.b32.xlu0 %v2077_v25, %s1918_s26  ;;  %v242_v24 = vld [vmem:[%s1987_s24 + $0x9a] sm:$0xff]  ;;  %v251_v25 = vld [vmem:[%s1987_s24 + $0x4b] sm:$0xff] }
  0x4c   : > { %497 = vrot.lane.b32.xlu1 %v240_v26, %s1918_s26  ;;  %495 = vrot.lane.b32.xlu0 %v239_v27, %s1918_s26 }
  0x50   : > { %539 = vrot.lane.b32.xlu1 %v245_v28, %s1919_s27  ;;  %499 = vrot.lane.b32.xlu0 %v2088_v29, %s1918_s26  ;;  %v257_v28 = vld [vmem:[%s1987_s24 + $0x93] sm:$0xff] }
  0x54   : > { %541 = vrot.lane.b32.xlu1 %v246_v30, %s1919_s27  ;;  %555 = vrot.lane.b32.xlu0 %v253_v31, %s1919_s27  ;;  %v249_v30 = vld [vmem:[%s1987_s24 + $0x33] sm:$0xff] }
  0x58   : > { %603 = vrot.lane.b32.xlu1 %v261_v32, %s1920_s28  ;;  %557 = vrot.lane.b32.xlu0 %v254_v33, %s1919_s27 }
  0x5c   : > { %605 = vrot.lane.b32.xlu1 %v262_v34, %s1920_s28  ;;  %619 = vrot.lane.b32.xlu0 %v269_v35, %s1920_s28 }
  0x60   : > { %667 = vrot.lane.b32.xlu1 %v1616_v36, %s1921_s29  ;;  %621 = vrot.lane.b32.xlu0 %v270_v37, %s1920_s28 }
  0x64   : > { %669 = vrot.lane.b32.xlu1 %v1617_v38, %s1921_s29  ;;  %683 = vrot.lane.b32.xlu0 %v2111_v39, %s1921_s29 }
  0x68   : > { %731 = vrot.lane.b32.xlu1 %v1990_v0, %s1922_s30  ;;  %685 = vrot.lane.b32.xlu0 %v2117_v40, %s1921_s29  ;;  %v1627_v0 = vld [vmem:[%s1987_s24 + $0x98] sm:$0xff] }
  0x6c   : > { %543 = vrot.lane.b32.xlu1 %v247_v41, %s1919_s27  ;;  %747 = vrot.lane.b32.xlu0 %v2024_v11, %s1922_s30 }
  0x70   : > { %733 = vrot.lane.b32.xlu1 %v1995_v2, %s1922_s30  ;;  %559 = vrot.lane.b32.xlu0 %v255_v42, %s1919_s27 }
  0x74   : > { %795 = vrot.lane.b32.xlu1 %v231_v19, %s1923_s4  ;;  %749 = vrot.lane.b32.xlu0 %v2021_v10, %s1922_s30 }
  0x78   : > { %545 = vrot.lane.b32.xlu1 %v248_v43, %s1919_s27  ;;  %811 = vrot.lane.b32.xlu0 %v239_v27, %s1923_s4 }
  0x7c   : > { %607 = vrot.lane.b32.xlu1 %v263_v44, %s1920_s28  ;;  %561 = vrot.lane.b32.xlu0 %v256_v45, %s1919_s27 }
  0x80   : > { %797 = vrot.lane.b32.xlu1 %v2049_v18, %s1923_s4  ;;  %623 = vrot.lane.b32.xlu0 %v271_v46, %s1920_s28 }
  0x84   : > { %859 = vrot.lane.b32.xlu1 %v247_v41, %s1924_s5  ;;  %813 = vrot.lane.b32.xlu0 %v240_v26, %s1923_s4 }
  0x88   : > { %609 = vrot.lane.b32.xlu1 %v264_v47, %s1920_s28  ;;  %875 = vrot.lane.b32.xlu0 %v255_v42, %s1924_s5  ;;  %v1288_v42 = vld [vmem:[%s2969_s1 + $0x10] sm:$0xff] }
  0x8a   : > { %v416_v50 = vpop.permute.xlu1 %415  ;;  %v2152_v51 = vpop.permute.xlu0 %411 }
  0x8b   : > { %v2155_v52 = vsel %vm1099_vm0, %v1616_v36, %v416_v50 }
  0x8c   : > { %671 = vrot.lane.b32.xlu1 %v1618_v48, %s1921_s29  ;;  %625 = vrot.lane.b32.xlu0 %v272_v49, %s1920_s28 }
  0x8e   : > { %v418_v54 = vpop.permute.xlu1 %417  ;;  %v2160_v55 = vpop.permute.xlu0 %413 }
  0x8f   : > { %2980 = vst [vmem:[#allocation3_spill] sm:$0xff] %v2160_v55  ;;  %v2163_v56 = vsel %vm1099_vm0, %v1617_v38, %v418_v54 }
  0x90   : > { %861 = vrot.lane.b32.xlu1 %v248_v43, %s1924_s5  ;;  %687 = vrot.lane.b32.xlu0 %v1626_v53, %s1921_s29  ;;  %v1289_v43 = vld [vmem:[%s2969_s1 + $0x18] sm:$0xff] }
  0x92   : > { %v422_v58 = vpop.permute.xlu1 %421  ;;  %v420_v59 = vpop.permute.xlu0 %419 }
  0x93   : > { %v2169_v60 = vsel %vm1099_vm0, %v202_v57, %v422_v58  ;;  %v2172_v61 = vsel %vm1099_vm0, %v1618_v48, %v420_v59 }
  0x94   : > { %923 = vrot.lane.b32.xlu1 %v263_v44, %s1925_s6  ;;  %877 = vrot.lane.b32.xlu0 %v256_v45, %s1924_s5  ;;  %v1811_v44 = vpack.c.bf16 %v1289_v43, %v1288_v42  ;;  %v258_v45 = vld [vmem:[%s1987_s24 + $0x9b] sm:$0xff] }
  0x96   : > { %v2176_v62 = vpop.permute.xlu1 %425  ;;  %v2178_v63 = vpop.permute.xlu0 %423 }
  0x97   : > { %2981 = vst [vmem:[#allocation4_spill] sm:$0xff] %v2176_v62  ;;  %2982 = vst [vmem:[#allocation5_spill] sm:$0xff] %v2178_v63  ;;  %v244_v63 = vld [vmem:[%s1987_s24 + $0xb2] sm:$0xff] }
  0x98   : > { %673 = vrot.lane.b32.xlu1 %v202_v57, %s1921_s29  ;;  %939 = vrot.lane.b32.xlu0 %v271_v46, %s1925_s6  ;;  %v250_v46 = vld [vmem:[%s1987_s24 + $0x3b] sm:$0xff] }
  0x9a   : > { %v2183_v1 = vpop.permute.xlu1 %429  ;;  %v2185_v2 = vpop.permute.xlu0 %427 }
  0x9b   : > { %2983 = vst [vmem:[#allocation6_spill] sm:$0xff] %v2183_v1 }
  0x9c   : > { %735 = vrot.lane.b32.xlu1 %v2003_v5, %s1922_s30  ;;  %689 = vrot.lane.b32.xlu0 %v1627_v0, %s1921_s29 }
  0x9e   : > { %v434_v3 = vpop.permute.xlu1 %433  ;;  %v432_v8 = vpop.permute.xlu0 %431 }
  0x9f   : > { %v2192_v10 = vsel %vm1099_vm0, %v2117_v40, %v434_v3  ;;  %v2196_v11 = vsel %vm1099_vm0, %v2111_v39, %v432_v8  ;;  %v1286_v39 = vld [vmem:[%s2969_s1] sm:$0xff]  ;;  %v1287_v40 = vld [vmem:[%s2969_s1 + $0x8] sm:$0xff] }
  0xa0   : > { %925 = vrot.lane.b32.xlu1 %v264_v47, %s1925_s6  ;;  %751 = vrot.lane.b32.xlu0 %v2032_v13, %s1922_s30  ;;  %v1807_v41 = vpack.c.bf16 %v1287_v40, %v1286_v39  ;;  %v2325_v40 = vld [vmem:[%s1987_s24 + $0xa8] sm:$0xff] }
  0xa1   : > { %2996 = vst [vmem:[#allocation19_spill] sm:$0xff] %v2325_v40 }
  0xa2   : > { %v438_v16 = vpop.permute.xlu1 %437  ;;  %v436_v17 = vpop.permute.xlu0 %435  ;;  %1808 = vmatprep.subr.bf16.mxu0 %v1807_v41  ;;  %1819 = vmatprep.subr.bf16.mxu1 %v1807_v41 }
  0xa3   : > { %v2202_v18 = vsel %vm1099_vm0, %v1627_v0, %v438_v16  ;;  %v2205_v19 = vsel %vm1099_vm0, %v1626_v53, %v436_v17  ;;  %1810 = vmatpush3.bf16.msra.mxu0 %v1807_v41  ;;  %1822 = vmatpush3.bf16.msra.mxu1 %v1807_v41  ;;  %v266_v17 = vld [vmem:[%s1987_s24 + $0x3c] sm:$0xff] }
  0xa4   : > { %987 = vrot.lane.b32.xlu1 %v1618_v48, %s1926_s7  ;;  %941 = vrot.lane.b32.xlu0 %v272_v49, %s1925_s6  ;;  %v1290_v49 = vld [vmem:[%s2969_s1 + $0x20] sm:$0xff] }
  0xa5   : > { %1812 = vmatprep.subr.bf16.mxu0 %v1811_v44  ;;  %1820 = vmatprep.subr.bf16.mxu1 %v1811_v44 }
  0xa6   : > { %v2210_v26 = vpop.permute.xlu1 %441  ;;  %v2212_v27 = vpop.permute.xlu0 %439 }
  0xa7   : > { %2984 = vst [vmem:[#allocation7_spill] sm:$0xff] %v2210_v26  ;;  %2985 = vst [vmem:[#allocation8_spill] sm:$0xff] %v2212_v27  ;;  %1814 = vmatpush3.bf16.msra.mxu0 %v1811_v44  ;;  %1823 = vmatpush3.bf16.msra.mxu1 %v1811_v44  ;;  %v243_v44 = vld [vmem:[%s1987_s24 + $0xaa] sm:$0xff] }
  0xa8   : > { %501 = vrot.lane.b32.xlu1 %v242_v24, %s1918_s26  ;;  %1003 = vrot.lane.b32.xlu0 %v1626_v53, %s1926_s7  ;;  %v265_v53 = vld [vmem:[%s1987_s24 + $0x34] sm:$0xff] }
  0xaa   : > { %v2218_v31 = vpop.permute.xlu1 %477  ;;  %v2220_v32 = vpop.permute.xlu0 %475 }
  0xab   : > { %2986 = vst [vmem:[#allocation9_spill] sm:$0xff] %v2218_v31 }
  0xac   : > { %563 = vrot.lane.b32.xlu1 %v257_v28, %s1919_s27  ;;  %547 = vrot.lane.b32.xlu0 %v249_v30, %s1919_s27 }
  0xae   : > { %v2224_v33 = vpop.permute.xlu1 %481  ;;  %v2226_v34 = vpop.permute.xlu0 %479 }
  0xb0   : > { %753 = vrot.lane.b32.xlu1 %v2029_v12, %s1922_s30  ;;  %737 = vrot.lane.b32.xlu0 %v2000_v4, %s1922_s30 }
  0xb2   : > { %v2232_v35 = vpop.permute.xlu1 %485  ;;  %v2234_v36 = vpop.permute.xlu0 %483 }
  0xb4   : > { %815 = vrot.lane.b32.xlu1 %v2088_v29, %s1923_s4  ;;  %799 = vrot.lane.b32.xlu0 %v2059_v21, %s1923_s4 }
  0xb6   : > { %v2240_v37 = vpop.permute.xlu1 %489  ;;  %v2242_v38 = vpop.permute.xlu0 %487 }
  0xb7   : > { %2987 = vst [vmem:[#allocation10_spill] sm:$0xff] %v2240_v37  ;;  %2988 = vst [vmem:[#allocation11_spill] sm:$0xff] %v2242_v38 }
  0xb8   : > { %1005 = vrot.lane.b32.xlu1 %v1627_v0, %s1926_s7  ;;  %989 = vrot.lane.b32.xlu0 %v202_v57, %s1926_s7 }
  0xba   : > { %v2252_v21 = vpop.permute.xlu1 %493  ;;  %v2254_v29 = vpop.permute.xlu0 %491 }
  0xbb   : > { %2989 = vst [vmem:[#allocation12_spill] sm:$0xff] %v2252_v21 }
  0xbc   : > { %1067 = vrot.lane.b32.xlu1 %v2032_v13, %s1927_s23  ;;  %1051 = vrot.lane.b32.xlu0 %v2003_v5, %s1927_s23  ;;  %v1291_v13 = vld [vmem:[%s2969_s1 + $0x28] sm:$0xff]  ;;  %v273_v5 = vld [vmem:[%s1987_s24 + $0x94] sm:$0xff] }
  0xbd   : > { %v1815_v50 = vpack.c.bf16 %v1291_v13, %v1290_v49 }
  0xbe   : > { %v2268_v47 = vpop.permute.xlu1 %497  ;;  %v2270_v48 = vpop.permute.xlu0 %495 }
  0xbf   : > { %1816 = vmatprep.subr.bf16.mxu0 %v1815_v50  ;;  %1821 = vmatprep.subr.bf16.mxu1 %v1815_v50 }
  0xc0   : > { %565 = vrot.lane.b32.xlu1 %v258_v45, %s1919_s27  ;;  %549 = vrot.lane.b32.xlu0 %v250_v46, %s1919_s27 }
  0xc1   : > { %1818 = vmatpush3.bf16.msra.mxu0 %v1815_v50  ;;  %1824 = vmatpush3.bf16.msra.mxu1 %v1815_v50  ;;  %v2349_v50 = vld [vmem:[%s1987_s24 + $0x50] sm:$0xff] }
  0xc2   : > { %v2282_v54 = vpop.permute.xlu1 %539  ;;  %v2284_v57 = vpop.permute.xlu0 %499  ;;  %2999 = vst [vmem:[#allocation22_spill] sm:$0xff] %v2349_v50 }
  0xc4   : > { %627 = vrot.lane.b32.xlu1 %v273_v5, %s1920_s28  ;;  %611 = vrot.lane.b32.xlu0 %v265_v53, %s1920_s28 }
  0xc6   : > { %v2288_v58 = vpop.permute.xlu1 %541  ;;  %v2290_v59 = vpop.permute.xlu0 %555 }
  0xc7   : > { %2990 = vst [vmem:[#allocation13_spill] sm:$0xff] %v2288_v58 }
  0xc8   : > { %817 = vrot.lane.b32.xlu1 %v242_v24, %s1923_s4  ;;  %801 = vrot.lane.b32.xlu0 %v2056_v20, %s1923_s4  ;;  %v274_v20 = vld [vmem:[%s1987_s24 + $0x9c] sm:$0xff] }
  0xca   : > { %v2295_v0 = vpop.permute.xlu1 %603  ;;  %v2297_v3 = vpop.permute.xlu0 %557 }
  0xcb   : > { %2991 = vst [vmem:[#allocation14_spill] sm:$0xff] %v2297_v3 }
  0xcc   : > { %879 = vrot.lane.b32.xlu1 %v257_v28, %s1924_s5  ;;  %863 = vrot.lane.b32.xlu0 %v249_v30, %s1924_s5 }
  0xce   : > { %v2301_v8 = vpop.permute.xlu1 %605  ;;  %v2303_v16 = vpop.permute.xlu0 %619 }
  0xcf   : > { %2992 = vst [vmem:[#allocation15_spill] sm:$0xff] %v2301_v8 }
  0xd0   : > { %1069 = vrot.lane.b32.xlu1 %v2029_v12, %s1927_s23  ;;  %1053 = vrot.lane.b32.xlu0 %v2000_v4, %s1927_s23  ;;  %v2322_v12 = vld [vmem:[%s1987_s24 + $0x48] sm:$0xff] }
  0xd1   : > { %2995 = vst [vmem:[#allocation18_spill] sm:$0xff] %v2322_v12 }
  0xd2   : > { %v2311_v24 = vpop.permute.xlu1 %667  ;;  %v2313_v39 = vpop.permute.xlu0 %621 }
  0xd3   : > { %2993 = vst [vmem:[#allocation16_spill] sm:$0xff] %v2313_v39 }
  0xd4   : > { %629 = vrot.lane.b32.xlu1 %v274_v20, %s1920_s28  ;;  %613 = vrot.lane.b32.xlu0 %v266_v17, %s1920_s28 }
  0xd6   : > { %v2317_v28 = vpop.permute.xlu1 %669  ;;  %v2319_v30 = vpop.permute.xlu0 %683 }
  0xd7   : > { %2994 = vst [vmem:[#allocation17_spill] sm:$0xff] %v2317_v28 }
  0xd8   : > { %691 = vrot.lane.b32.xlu1 %v2325_v40, %s1921_s29  ;;  %675 = vrot.lane.b32.xlu0 %v2322_v12, %s1921_s29 }
  0xda   : > { %v2331_v4 = vpop.permute.xlu1 %731  ;;  %v2333_v41 = vpop.permute.xlu0 %685 }
  0xdb   : > { %2997 = vst [vmem:[#allocation20_spill] sm:$0xff] %v2333_v41 }
  0xdc   : > { %881 = vrot.lane.b32.xlu1 %v258_v45, %s1924_s5  ;;  %865 = vrot.lane.b32.xlu0 %v250_v46, %s1924_s5 }
  0xde   : > { %v2337_v42 = vpop.permute.xlu1 %543  ;;  %v2339_v43 = vpop.permute.xlu0 %747 }
  0xe0   : > { %943 = vrot.lane.b32.xlu1 %v273_v5, %s1925_s6  ;;  %927 = vrot.lane.b32.xlu0 %v265_v53, %s1925_s6  ;;  %v2359_v5 = vld [vmem:[%s1987_s24 + $0xb0] sm:$0xff] }
  0xe1   : > { %3001 = vst [vmem:[#allocation24_spill] sm:$0xff] %v2359_v5 }
  0xe2   : > { %v2344_v49 = vpop.permute.xlu1 %733  ;;  %v2346_v13 = vpop.permute.xlu0 %559 }
  0xe3   : > { %2998 = vst [vmem:[#allocation21_spill] sm:$0xff] %v2344_v49 }
  0xe4   : > { %677 = vrot.lane.b32.xlu1 %v2349_v50, %s1921_s29  ;;  %503 = vrot.lane.b32.xlu0 %v243_v44, %s1918_s26 }
  0xe6   : > { %v2354_v45 = vpop.permute.xlu1 %795  ;;  %v2356_v46 = vpop.permute.xlu0 %749 }
  0xe7   : > { %3000 = vst [vmem:[#allocation23_spill] sm:$0xff] %v2356_v46 }
  0xe8   : > { %739 = vrot.lane.b32.xlu1 %v2011_v7, %s1922_s30  ;;  %693 = vrot.lane.b32.xlu0 %v2359_v5, %s1921_s29 }
  0xea   : > { %v2365_v53 = vpop.permute.xlu1 %545  ;;  %v2367_v37 = vpop.permute.xlu0 %811 }
  0xec   : > { %929 = vrot.lane.b32.xlu1 %v266_v17, %s1925_s6  ;;  %755 = vrot.lane.b32.xlu0 %v2040_v15, %s1922_s30  ;;  %v259_v17 = vld [vmem:[%s1987_s24 + $0xab] sm:$0xff] }
  0xee   : > { %v2372_v62 = vpop.permute.xlu1 %607  ;;  %v2374_v38 = vpop.permute.xlu0 %561 }
  0xf0   : > { %991 = vrot.lane.b32.xlu1 %v2322_v12, %s1926_s7  ;;  %945 = vrot.lane.b32.xlu0 %v274_v20, %s1925_s6 }
  0xf2   : > { %v2380_v26 = vpop.permute.xlu1 %797  ;;  %v2382_v27 = vpop.permute.xlu0 %623 }
  0xf3   : > { %3002 = vst [vmem:[#allocation25_spill] sm:$0xff] %v2380_v26 }
  0xf4   : > { %505 = vrot.lane.b32.xlu1 %v244_v63, %s1918_s26  ;;  %1007 = vrot.lane.b32.xlu0 %v2325_v40, %s1926_s7  ;;  %s1610_s26 = sshll.u32 %s3056_s13, 5 }
  0xf6   : > { %v2389_v46 = vpop.permute.xlu1 %859  ;;  %v2391_v49 = vpop.permute.xlu0 %813 }
  0xf7   : > { %3003 = vst [vmem:[#allocation26_spill] sm:$0xff] %v2391_v49 }
  0xf8   : > { %567 = vrot.lane.b32.xlu1 %v259_v17, %s1919_s27  ;;  %551 = vrot.lane.b32.xlu0 %v251_v25, %s1919_s27 }
  0xfa   : > { %v2395_v20 = vpop.permute.xlu1 %609  ;;  %v2397_v12 = vpop.permute.xlu0 %875 }
  0xfc   : > { %757 = vrot.lane.b32.xlu1 %v2037_v14, %s1922_s30  ;;  %741 = vrot.lane.b32.xlu0 %v2008_v6, %s1922_s30 }
  0xfe   : > { %v2403_v40 = vpop.permute.xlu1 %671  ;;  %v2405_v26 = vpop.permute.xlu0 %625 }
 0x100   : > { %819 = vrot.lane.b32.xlu1 %v243_v44, %s1923_s4  ;;  %803 = vrot.lane.b32.xlu0 %v2069_v23, %s1923_s4  ;;  %v2425_v23 = vld [vmem:[%s1987_s24 + $0xb3] sm:$0xff] }
 0x101   : > { %v2428_v44 = vld [vmem:[%s1987_s24 + $0x53] sm:$0xff] }
 0x102   : > { %v2410_v49 = vpop.permute.xlu1 %861  ;;  %v688_v41 = vpop.permute.xlu0 %687 }
 0x103   : > { %3004 = vst [vmem:[#allocation27_spill] sm:$0xff] %v2410_v49 }
 0x104   : > { %1009 = vrot.lane.b32.xlu1 %v2359_v5, %s1926_s7  ;;  %993 = vrot.lane.b32.xlu0 %v2349_v50, %s1926_s7  ;;  %v2439_v50 = vld [vmem:[%s1987_s24 + $0xac] sm:$0xff] }
 0x106   : > { %v2416_v28 = vpop.permute.xlu1 %923  ;;  %v2418_v39 = vpop.permute.xlu0 %877 }
 0x107   : > { %3005 = vst [vmem:[#allocation28_spill] sm:$0xff] %v2418_v39 }
 0x108   : > { %1071 = vrot.lane.b32.xlu1 %v2040_v15, %s1927_s23  ;;  %1055 = vrot.lane.b32.xlu0 %v2011_v7, %s1927_s23  ;;  %v2442_v15 = vld [vmem:[%s1987_s24 + $0x4c] sm:$0xff] }
 0x10a   : > { %v2430_v49 = vpop.permute.xlu1 %673  ;;  %v2432_v5 = vpop.permute.xlu0 %939 }
 0x10b   : > { %3006 = vst [vmem:[#allocation29_spill] sm:$0xff] %v2430_v49  ;;  %v1127_v49 = vsel %vm1116_vm1, %v2196_v11, %v2270_v48 }
 0x10c   : > { %569 = vrot.lane.b32.xlu1 %v2425_v23, %s1919_s27  ;;  %553 = vrot.lane.b32.xlu0 %v2428_v44, %s1919_s27 }
 0x10e   : > { %v736_v39 = vpop.permute.xlu1 %735  ;;  %v2444_v7 = vpop.permute.xlu0 %689 }
 0x10f   : > { %3007 = vst [vmem:[#allocation30_spill] sm:$0xff] %v2444_v7 }
 0x110   : > { %631 = vrot.lane.b32.xlu1 %v2439_v50, %s1920_s28  ;;  %615 = vrot.lane.b32.xlu0 %v2442_v15, %s1920_s28 }
 0x112   : > { %v2450_v8 = vpop.permute.xlu1 %925  ;;  %v752_v3 = vpop.permute.xlu0 %751 }
 0x113   : > { %3008 = vst [vmem:[#allocation31_spill] sm:$0xff] %v2450_v8 }
 0x114   : > { %821 = vrot.lane.b32.xlu1 %v244_v63, %s1923_s4  ;;  %805 = vrot.lane.b32.xlu0 %v2066_v22, %s1923_s4  ;;  %v2470_v22 = vld [vmem:[%s1987_s24 + $0xb4] sm:$0xff] }
 0x115   : > { %3010 = vst [vmem:[#allocation33_spill] sm:$0xff] %v2470_v22  ;;  %v2473_v63 = vld [vmem:[%s1987_s24 + $0x54] sm:$0xff] }
 0x116   : > { %v2455_v58 = vpop.permute.xlu1 %987  ;;  %v2457_v21 = vpop.permute.xlu0 %941  ;;  %3011 = vst [vmem:[#allocation34_spill] sm:$0xff] %v2473_v63 }
 0x117   : > { %3009 = vst [vmem:[#allocation32_spill] sm:$0xff] %v2457_v21 }
 0x118   : > { %883 = vrot.lane.b32.xlu1 %v259_v17, %s1924_s5  ;;  %867 = vrot.lane.b32.xlu0 %v251_v25, %s1924_s5  ;;  %v2484_v25 = vld [vmem:[%s1987_s24 + $0xc0] sm:$0xff] }
 0x119   : > { %v2488_v17 = vld [vmem:[%s1987_s24 + $0x60] sm:$0xff] }
 0x11a   : > { %v2461_v31 = vpop.permute.xlu1 %501  ;;  %v2463_v8 = vpop.permute.xlu0 %1003  ;;  %v1108_v48 = vsel %vm1099_vm0, %v2488_v17, %v2185_v2 }
 0x11c   : > { %1073 = vrot.lane.b32.xlu1 %v2037_v14, %s1927_s23  ;;  %1057 = vrot.lane.b32.xlu0 %v2008_v6, %s1927_s23  ;;  %v197_v14 = vld [vmem:[%s1987_s24] sm:$0xff]  ;;  %v1119_v6 = vsel %vm1116_vm1, %v2155_v52, %v2226_v34 }
 0x11d   : > { %v1100_v34 = vsel %vm1099_vm0, %v197_v14, %v2152_v51 }
 0x11e   : > { %v2475_v21 = vpop.permute.xlu1 %563  ;;  %v2477_v7 = vpop.permute.xlu0 %547 }
 0x120   : > { %633 = vrot.lane.b32.xlu1 %v2470_v22, %s1920_s28  ;;  %617 = vrot.lane.b32.xlu0 %v2473_v63, %s1920_s28  ;;  %v1136_v63 = vsel %vm1133_vm2, %v1119_v6, %v2337_v42  ;;  %v1144_v22 = vsel %vm1133_vm2, %v1127_v49, %v2346_v13  ;;  %v1125_v49 = vsel %vm1116_vm1, %v1108_v48, %v2254_v29 }
 0x121   : > { %v1153_v52 = vsel %vm1150_vm3, %v1136_v63, %v2372_v62  ;;  %v1161_v11 = vsel %vm1150_vm3, %v1144_v22, %v2382_v27  ;;  %v1117_v27 = vsel %vm1116_vm1, %v1100_v34, %v2220_v32 }
 0x122   : > { %v2496_v1 = vpop.permute.xlu1 %753  ;;  %v2498_v55 = vpop.permute.xlu0 %737  ;;  %v1170_v42 = vsel %vm1167_vm4, %v1153_v52, %v2403_v40  ;;  %v1178_v62 = vsel %vm1167_vm4, %v1161_v11, %v688_v41  ;;  %v1134_v2 = vsel %vm1133_vm2, %v1117_v27, %v2282_v54  ;;  %v1142_v40 = vsel %vm1133_vm2, %v1125_v49, %v2290_v59 }
 0x123   : > { %v1187_v13 = vsel %vm1184_vm5, %v1170_v42, %v736_v39  ;;  %v1195_v22 = vsel %vm1184_vm5, %v1178_v62, %v752_v3  ;;  %v1151_v29 = vsel %vm1150_vm3, %v1134_v2, %v2295_v0  ;;  %v1159_v3 = vsel %vm1150_vm3, %v1142_v40, %v2303_v16  ;;  %v3019_v2 = vld [vmem:[#allocation12_spill] sm:$0xff] }
 0x124   : > { %695 = vrot.lane.b32.xlu1 %v2484_v25, %s1921_s29  ;;  %679 = vrot.lane.b32.xlu0 %v2488_v17, %s1921_s29  ;;  %v1168_v54 = vsel %vm1167_vm4, %v1151_v29, %v2311_v24  ;;  %v1176_v59 = vsel %vm1167_vm4, %v1159_v3, %v2319_v30  ;;  %v1128_v42 = vsel %vm1116_vm1, %v2192_v10, %v2268_v47  ;;  %v3012_v47 = vld [vmem:[#allocation33_spill] sm:$0xff] }
 0x125   : > { %v1185_v0 = vsel %vm1184_vm5, %v1168_v54, %v2331_v4  ;;  %v1193_v16 = vsel %vm1184_vm5, %v1176_v59, %v2339_v43 }
 0x126   : > { %v816_v51 = vpop.permute.xlu1 %815  ;;  %v800_v63 = vpop.permute.xlu0 %799  ;;  %v1210_v24 = vsel %vm1201_vm6, %v1193_v16, %v2367_v37 }
 0x127   : > { %v2531_v41 = vsel %vm1201_vm6, %v1195_v22, %v816_v51  ;;  %v2534_v32 = vsel %vm1201_vm6, %v1187_v13, %v800_v63  ;;  %v1227_v4 = vsel %vm1218_vm7, %v1210_v24, %v2397_v12  ;;  %v3016_v13 = vld [vmem:[#allocation29_spill] sm:$0xff] }
 0x128   : > { %885 = vrot.lane.b32.xlu1 %v2425_v23, %s1924_s5  ;;  %869 = vrot.lane.b32.xlu0 %v2428_v44, %s1924_s5  ;;  %v1202_v44 = vsel %vm1201_vm6, %v1185_v0, %v2354_v45  ;;  %v1244_v37 = vsel %vm1235_vm8, %v1227_v4, %v2432_v5  ;;  %v2573_v45 = vld [vmem:[%s1987_s24 + $0xc8] sm:$0xff]  ;;  %v1130_v5 = vsel %vm1116_vm1, %v2202_v18, %v2461_v31  ;;  %v3020_v0 = vld [vmem:[#allocation13_spill] sm:$0xff] }
 0x129   : > { %v1219_v30 = vsel %vm1218_vm7, %v1202_v44, %v2389_v46  ;;  %v1261_v12 = vsel %vm1252_vm9, %v1244_v37, %v2463_v8  ;;  %v1122_v8 = vsel %vm1116_vm1, %v2169_v60, %v2232_v35  ;;  %v1121_v60 = vsel %vm1116_vm1, %v2172_v61, %v2234_v36  ;;  %v198_v31 = vld [vmem:[%s1987_s24 + $0x8] sm:$0xff]  ;;  %v3021_v44 = vld [vmem:[#allocation14_spill] sm:$0xff]  ;;  %v3023_v37 = vld [vmem:[#allocation16_spill] sm:$0xff] }
 0x12a   : > { %v2552_v39 = vpop.permute.xlu1 %1005  ;;  %v2554_v23 = vpop.permute.xlu0 %989  ;;  %v1236_v43 = vsel %vm1235_vm8, %v1219_v30, %v2416_v28  ;;  %v1129_v18 = vsel %vm1116_vm1, %v2205_v19, %v2284_v57  ;;  %v1120_v35 = vsel %vm1116_vm1, %v2163_v56, %v2224_v33  ;;  %v1138_v62 = vsel %vm1133_vm2, %v1121_v60, %v2477_v7  ;;  %v3013_v7 = vld [vmem:[#allocation34_spill] sm:$0xff] }
 0x12b   : > { %v1253_v46 = vsel %vm1252_vm9, %v1236_v43, %v2455_v58  ;;  %v2591_v58 = vld [vmem:[%s1987_s24 + $0xc1] sm:$0xff]  ;;  %v1137_v19 = vsel %vm1133_vm2, %v1120_v35, %v2365_v53  ;;  %v1145_v57 = vsel %vm1133_vm2, %v1128_v42, %v2374_v38 }
 0x12c   : > { %947 = vrot.lane.b32.xlu1 %v2439_v50, %s1925_s6  ;;  %931 = vrot.lane.b32.xlu0 %v2442_v15, %s1925_s6  ;;  %v2580_v15 = vld [vmem:[%s1987_s24 + $0x68] sm:$0xff]  ;;  %v1154_v10 = vsel %vm1150_vm3, %v1137_v19, %v2395_v20  ;;  %v3015_v38 = vld [vmem:[#allocation6_spill] sm:$0xff] }
 0x12d   : > { %v3014_v53 = vld [vmem:[#allocation3_spill] sm:$0xff]  ;;  %v1109_v49 = vsel %vm1099_vm0, %v2580_v15, %v3015_v38  ;;  %v1171_v22 = vsel %vm1167_vm4, %v1154_v10, %v3016_v13  ;;  %v3017_v20 = vld [vmem:[#allocation30_spill] sm:$0xff] }
 0x12e   : > { %v1068_v50 = vpop.permute.xlu1 %1067  ;;  %v1052_v14 = vpop.permute.xlu0 %1051  ;;  %v1101_v27 = vsel %vm1099_vm0, %v198_v31, %v3014_v53  ;;  %v1126_v40 = vsel %vm1116_vm1, %v1109_v49, %v3019_v2  ;;  %v1188_v3 = vsel %vm1184_vm5, %v1171_v22, %v2498_v55  ;;  %v3022_v43 = vld [vmem:[#allocation15_spill] sm:$0xff]  ;;  %v3029_v31 = vld [vmem:[#allocation26_spill] sm:$0xff] }
 0x12f   : > { %v1270_v6 = vsel %vm1269_vm10, %v1253_v46, %v1052_v14  ;;  %v1278_v28 = vsel %vm1269_vm10, %v1261_v12, %v1068_v50  ;;  %v1143_v24 = vsel %vm1133_vm2, %v1126_v40, %v3021_v44  ;;  %v3024_v46 = vld [vmem:[#allocation17_spill] sm:$0xff]  ;;  %v3025_v50 = vld [vmem:[#allocation20_spill] sm:$0xff]  ;;  %v3030_v42 = vld [vmem:[#allocation27_spill] sm:$0xff] }
 0x130   : > { %697 = vrot.lane.b32.xlu1 %v2573_v45, %s1921_s29  ;;  %681 = vrot.lane.b32.xlu0 %v2580_v15, %s1921_s29  ;;  %v1160_v55 = vsel %vm1150_vm3, %v1143_v24, %v3023_v37  ;;  %v3034_v13 = vld [vmem:[#allocation2_spill] sm:$0xff] }
 0x131   : > { %1783 = vmatprep.mubr.msk.f32.mxu0 %vm1299_vm11, %v1270_v6  ;;  %1795 = vmatprep.mubr.msk.f32.mxu1 %vm1299_vm11, %v1278_v28  ;;  %v1177_v14 = vsel %vm1167_vm4, %v1160_v55, %v3025_v50  ;;  %v1647_v6 = vld [vmem:[%s1987_s24 + $0xc9] sm:$0xff] }
 0x132   : > { %v566_v52 = vpop.permute.xlu1 %565  ;;  %v550_v11 = vpop.permute.xlu0 %549  ;;  %v1639_v28 = vld [vmem:[%s1987_s24 + $0x69] sm:$0xff] }
 0x133   : > { %v2600_v34 = vsel %vm1133_vm2, %v1130_v5, %v566_v52  ;;  %v2603_v48 = vsel %vm1133_vm2, %v1122_v8, %v550_v11  ;;  %v3026_v8 = vld [vmem:[#allocation21_spill] sm:$0xff]  ;;  %v3027_v52 = vld [vmem:[#allocation23_spill] sm:$0xff] }
 0x134   : > { %759 = vrot.lane.b32.xlu1 %v2591_v58, %s1922_s30  ;;  %743 = vrot.lane.b32.xlu0 %v2017_v9, %s1922_s30  ;;  %v1146_v9 = vsel %vm1133_vm2, %v1129_v18, %v2475_v21  ;;  %v1162_v21 = vsel %vm1150_vm3, %v1145_v57, %v2405_v26  ;;  %v3018_v26 = vld [vmem:[#allocation9_spill] sm:$0xff]  ;;  %v1194_v11 = vsel %vm1184_vm5, %v1177_v14, %v3027_v52  ;;  %v3033_v57 = vld [vmem:[#allocation32_spill] sm:$0xff]  ;;  %v1694_v50 = vld [vmem:[%s1987_s24 + $0xc4] sm:$0xff] }
 0x135   : > { %v1179_v51 = vsel %vm1167_vm4, %v1162_v21, %v3017_v20  ;;  %v1118_v63 = vsel %vm1116_vm1, %v1101_v27, %v3018_v26  ;;  %v1211_v35 = vsel %vm1201_vm6, %v1194_v11, %v3029_v31  ;;  %v1662_v21 = vld [vmem:[%s1987_s24 + $0xc2] sm:$0xff]  ;;  %v1687_v52 = vld [vmem:[%s1987_s24 + $0x6c] sm:$0xff]  ;;  %v1704_v31 = vld [vmem:[%s1987_s24 + $0x78] sm:$0xff] }
 0x136   : > { %v628_v61 = vpop.permute.xlu1 %627  ;;  %v612_v36 = vpop.permute.xlu0 %611  ;;  %v1196_v29 = vsel %vm1184_vm5, %v1179_v51, %v2496_v1  ;;  %v1135_v16 = vsel %vm1133_vm2, %v1118_v63, %v3020_v0  ;;  %v1718_v51 = vld [vmem:[%s1987_s24 + $0x61] sm:$0xff] }
 0x137   : > { %v1163_v56 = vsel %vm1150_vm3, %v1146_v9, %v628_v61  ;;  %v1155_v33 = vsel %vm1150_vm3, %v1138_v62, %v612_v36  ;;  %v1152_v1 = vsel %vm1150_vm3, %v1135_v16, %v3022_v43  ;;  %v3031_v62 = vld [vmem:[#allocation28_spill] sm:$0xff]  ;;  %v3032_v36 = vld [vmem:[#allocation31_spill] sm:$0xff] }
 0x138   : > { %949 = vrot.lane.b32.xlu1 %v3012_v47, %s1925_s6  ;;  %933 = vrot.lane.b32.xlu0 %v3013_v7, %s1925_s6  ;;  %v1169_v12 = vsel %vm1167_vm4, %v1152_v1, %v3024_v46  ;;  %v1228_v61 = vsel %vm1218_vm7, %v1211_v35, %v3031_v62  ;;  %v1679_v43 = vld [vmem:[%s1987_s24 + $0xcb] sm:$0xff] }
 0x139   : > { %v1186_v5 = vsel %vm1184_vm5, %v1169_v12, %v3026_v8  ;;  %v1245_v10 = vsel %vm1235_vm8, %v1228_v61, %v3033_v57  ;;  %v1671_v1 = vld [vmem:[%s1987_s24 + $0x6b] sm:$0xff]  ;;  %v3040_v57 = vld [vmem:[#allocation18_spill] sm:$0xff] }
 0x13a   : > { %v818_v54 = vpop.permute.xlu1 %817  ;;  %v802_v59 = vpop.permute.xlu0 %801  ;;  %v1262_v47 = vsel %vm1252_vm9, %v1245_v10, %v2552_v39  ;;  %v1686_v14 = vld [vmem:[%s1987_s24 + $0x64] sm:$0xff] }
 0x13b   : > { %v2662_v30 = vsel %vm1201_vm6, %v1196_v29, %v818_v54  ;;  %v2665_v4 = vsel %vm1201_vm6, %v1188_v3, %v802_v59  ;;  %v3036_v54 = vld [vmem:[#allocation19_spill] sm:$0xff] }
 0x13c   : > { %1011 = vrot.lane.b32.xlu1 %v2484_v25, %s1926_s7  ;;  %995 = vrot.lane.b32.xlu0 %v2488_v17, %s1926_s7  ;;  %v3028_v17 = vld [vmem:[#allocation25_spill] sm:$0xff]  ;;  %v3037_v35 = vld [vmem:[#allocation7_spill] sm:$0xff] }
 0x13d   : > { %v1203_v18 = vsel %vm1201_vm6, %v1186_v5, %v3028_v17  ;;  %v1695_v5 = vld [vmem:[%s1987_s24 + $0xcc] sm:$0xff] }
 0x13e   : > { %v2685_v60 = vpop.permute.xlu1 %879  ;;  %v2687_v25 = vpop.permute.xlu0 %863  ;;  %v1220_v9 = vsel %vm1218_vm7, %v1203_v18, %v3030_v42  ;;  %v1712_v18 = vld [vmem:[%s1987_s24 + $0xd8] sm:$0xff]  ;;  %v3038_v42 = vld [vmem:[#allocation24_spill] sm:$0xff] }
 0x13f   : > { %v1237_v19 = vsel %vm1235_vm8, %v1220_v9, %v3032_v36  ;;  %v1115_v9 = vsel %vm1099_vm0, %v3038_v42, %v3037_v35 }
 0x140   : > { %761 = vrot.lane.b32.xlu1 %v1647_v6, %s1922_s30  ;;  %745 = vrot.lane.b32.xlu0 %v1639_v28, %s1922_s30  ;;  %v1254_v7 = vsel %vm1252_vm9, %v1237_v19, %v2554_v23  ;;  %v3039_v19 = vld [vmem:[#allocation5_spill] sm:$0xff] }
 0x141   : > { %v1106_v10 = vsel %vm1099_vm0, %v3040_v57, %v3039_v19 }
 0x142   : > { %v1070_v53 = vpop.permute.xlu1 %1069  ;;  %v1054_v27 = vpop.permute.xlu0 %1053 }
 0x143   : > { %v1279_v38 = vsel %vm1269_vm10, %v1262_v47, %v1070_v53  ;;  %v1271_v49 = vsel %vm1269_vm10, %v1254_v7, %v1054_v27  ;;  %v1705_v47 = vld [vmem:[%s1987_s24 + $0x80] sm:$0xff]  ;;  %v3041_v7 = vld [vmem:[#allocation11_spill] sm:$0xff] }
 0x144   : > { %823 = vrot.lane.b32.xlu1 %v1662_v21, %s1923_s4  ;;  %807 = vrot.lane.b32.xlu0 %v3034_v13, %s1923_s4  ;;  %v1713_v21 = vld [vmem:[%s1987_s24 + $0xe0] sm:$0xff]  ;;  %v1123_v53 = vsel %vm1116_vm1, %v1106_v10, %v3041_v7 }
 0x145   : > { %1784 = vmatmul.mubr.msk.f32.vlgmr.msra.gmra.mrb[0].mxu0 %vm1299_vm11, %v1271_v49  ;;  %1796 = vmatmul.mubr.msk.f32.vlgmr.msra.gmra.mrb[0].mxu1 %vm1299_vm11, %v1279_v38 }
 0x146   : > { %v630_v39 = vpop.permute.xlu1 %629  ;;  %v614_v22 = vpop.permute.xlu0 %613 }
 0x147   : > { %v1164_v23 = vsel %vm1150_vm3, %v2600_v34, %v630_v39  ;;  %v1156_v20 = vsel %vm1150_vm3, %v2603_v48, %v614_v22  ;;  %v1663_v34 = vld [vmem:[%s1987_s24 + $0xca] sm:$0xff]  ;;  %v1728_v39 = vld [vmem:[%s1987_s24 + $0xd9] sm:$0xff] }
 0x148   : > { %1013 = vrot.lane.b32.xlu1 %v2573_v45, %s1926_s7  ;;  %997 = vrot.lane.b32.xlu0 %v2580_v15, %s1926_s7  ;;  %v1655_v48 = vld [vmem:[%s1987_s24 + $0x6a] sm:$0xff]  ;;  %v1720_v22 = vld [vmem:[%s1987_s24 + $0x79] sm:$0xff] }
 0x149   : > { %v1678_v15 = vld [vmem:[%s1987_s24 + $0xc3] sm:$0xff] }
 0x14a   : > { %v692_v26 = vpop.permute.xlu1 %691  ;;  %v676_v63 = vpop.permute.xlu0 %675 }
 0x14b   : > { %v1180_v2 = vsel %vm1167_vm4, %v1163_v56, %v692_v26  ;;  %v1172_v40 = vsel %vm1167_vm4, %v1155_v33, %v676_v63  ;;  %v1670_v56 = vld [vmem:[%s1987_s24 + $0x63] sm:$0xff] }
 0x14c   : > { %1075 = vrot.lane.b32.xlu1 %v2591_v58, %s1927_s23  ;;  %1059 = vrot.lane.b32.xlu0 %v1718_v51, %s1927_s23  ;;  %v3035_v58 = vld [vmem:[#allocation8_spill] sm:$0xff]  ;;  %v1729_v63 = vld [vmem:[%s1987_s24 + $0xe1] sm:$0xff] }
 0x14d   : > { %v1114_v59 = vsel %vm1099_vm0, %v3036_v54, %v3035_v58  ;;  %v1229_v54 = vsel %vm1218_vm7, %v2531_v41, %v2685_v60  ;;  %v3043_v60 = vld [vmem:[#allocation22_spill] sm:$0xff] }
 0x14e   : > { %v2731_v29 = vpop.permute.xlu1 %881  ;;  %v2733_v45 = vpop.permute.xlu0 %865 }
 0x150   : > { %825 = vrot.lane.b32.xlu1 %v1663_v34, %s1923_s4  ;;  %809 = vrot.lane.b32.xlu0 %v1655_v48, %s1923_s4 }
 0x152   : > { %v2739_v33 = vpop.permute.xlu1 %943  ;;  %v2741_v3 = vpop.permute.xlu0 %927 }
 0x154   : > { %887 = vrot.lane.b32.xlu1 %v1678_v15, %s1924_s5  ;;  %871 = vrot.lane.b32.xlu0 %v1670_v56, %s1924_s5 }
 0x156   : > { %v678_v0 = vpop.permute.xlu1 %677  ;;  %v504_v16 = vpop.permute.xlu0 %503 }
 0x157   : > { %v1173_v44 = vsel %vm1167_vm4, %v1156_v20, %v678_v0  ;;  %v1131_v24 = vsel %vm1116_vm1, %v1114_v59, %v504_v16  ;;  %v1221_v59 = vsel %vm1218_vm7, %v2534_v32, %v2687_v25  ;;  %v1246_v0 = vsel %vm1235_vm8, %v1229_v54, %v2739_v33  ;;  %v3042_v32 = vld [vmem:[#allocation4_spill] sm:$0xff]  ;;  %v3044_v33 = vld [vmem:[#allocation10_spill] sm:$0xff] }
 0x158   : > { %1077 = vrot.lane.b32.xlu1 %v1647_v6, %s1927_s23  ;;  %1061 = vrot.lane.b32.xlu0 %v1639_v28, %s1927_s23  ;;  %v1238_v16 = vsel %vm1235_vm8, %v1221_v59, %v2741_v3  ;;  %v1107_v25 = vsel %vm1099_vm0, %v3043_v60, %v3042_v32 }
 0x159   : > { %v1124_v3 = vsel %vm1116_vm1, %v1107_v25, %v3044_v33 }
 0x15a   : > { %v740_v37 = vpop.permute.xlu1 %739  ;;  %v694_v55 = vpop.permute.xlu0 %693 }
 0x15b   : > { %v1189_v46 = vsel %vm1184_vm5, %v1172_v40, %v740_v37  ;;  %v1181_v12 = vsel %vm1167_vm4, %v1164_v23, %v694_v55 }
 0x15c   : > { %889 = vrot.lane.b32.xlu1 %v1679_v43, %s1924_s5  ;;  %873 = vrot.lane.b32.xlu0 %v1671_v1, %s1924_s5 }
 0x15e   : > { %v2760_v6 = vpop.permute.xlu1 %929  ;;  %v756_v28 = vpop.permute.xlu0 %755 }
 0x15f   : > { %v1197_v8 = vsel %vm1184_vm5, %v1180_v2, %v756_v28  ;;  %v1721_v2 = vld [vmem:[%s1987_s24 + $0x81] sm:$0xff]  ;;  %s1609_s24 = sshll.u32 %s1899_s12, 4 }
 0x160   : > { %951 = vrot.lane.b32.xlu1 %v1694_v50, %s1925_s6  ;;  %935 = vrot.lane.b32.xlu0 %v1686_v14, %s1925_s6  ;;  %p187_p6 = scmp.lt.s32.totalorder %s1609_s24, 31 }
 0x162   : > { %v992_v11 = vpop.permute.xlu1 %991  ;;  %v2767_v17 = vpop.permute.xlu0 %945  ;;  %s3058_s24 = smov (!%p187_p6, %s1609_s24), 31 }
 0x163   : > { %s190_s27 = sadd.s32 %s1610_s26, %s3058_s24 }
 0x164   : > { %953 = vrot.lane.b32.xlu1 %v1695_v5, %s1925_s6  ;;  %937 = vrot.lane.b32.xlu0 %v1687_v52, %s1925_s6  ;;  %s1611_s28 = sshll.u32 %s190_s27, 3 }
 0x165   : > { %s2919_s6 = scalar_lea.vmem %s2971_s3, %s1611_s28 }
 0x166   : > { %v506_v62 = vpop.permute.xlu1 %505  ;;  %v1008_v61 = vpop.permute.xlu0 %1007 }
 0x167   : > { %v1132_v36 = vsel %vm1116_vm1, %v1115_v9, %v506_v62  ;;  %v1230_v9 = vsel %vm1218_vm7, %v2662_v30, %v2731_v29  ;;  %v1222_v62 = vsel %vm1218_vm7, %v2665_v4, %v2733_v45 }
 0x168   : > { %1015 = vrot.lane.b32.xlu1 %v1712_v18, %s1926_s7  ;;  %999 = vrot.lane.b32.xlu0 %v1704_v31, %s1926_s7 }
 0x16a   : > { %v568_v27 = vpop.permute.xlu1 %567  ;;  %v552_v38 = vpop.permute.xlu0 %551 }
 0x16b   : > { %v1148_v49 = vsel %vm1133_vm2, %v1131_v24, %v568_v27  ;;  %v1140_v13 = vsel %vm1133_vm2, %v1123_v53, %v552_v38  ;;  %v1263_v24 = vsel %vm1252_vm9, %v1246_v0, %v1008_v61  ;;  %v1239_v61 = vsel %vm1235_vm8, %v1222_v62, %v2760_v6 }
 0x16c   : > { %1017 = vrot.lane.b32.xlu1 %v1713_v21, %s1926_s7  ;;  %1001 = vrot.lane.b32.xlu0 %v1705_v47, %s1926_s7 }
 0x16e   : > { %v758_v23 = vpop.permute.xlu1 %757  ;;  %v742_v20 = vpop.permute.xlu0 %741 }
 0x16f   : > { %v1198_v51 = vsel %vm1184_vm5, %v1181_v12, %v758_v23  ;;  %v1190_v26 = vsel %vm1184_vm5, %v1173_v44, %v742_v20  ;;  %v1255_v44 = vsel %vm1252_vm9, %v1238_v16, %v992_v11 }
 0x170   : > { %1079 = vrot.lane.b32.xlu1 %v1728_v39, %s1927_s23  ;;  %1063 = vrot.lane.b32.xlu0 %v1720_v22, %s1927_s23 }
 0x172   : > { %v820_v40 = vpop.permute.xlu1 %819  ;;  %v804_v34 = vpop.permute.xlu0 %803 }
 0x173   : > { %v2799_v48 = vsel %vm1201_vm6, %v1197_v8, %v820_v40  ;;  %v2802_v15 = vsel %vm1201_vm6, %v1189_v46, %v804_v34 }
 0x174   : > { %1081 = vrot.lane.b32.xlu1 %v1729_v63, %s1927_s23  ;;  %1065 = vrot.lane.b32.xlu0 %v1721_v2, %s1927_s23 }
 0x176   : > { %v1010_v56 = vpop.permute.xlu1 %1009  ;;  %v994_v58 = vpop.permute.xlu0 %993 }
 0x177   : > { %v1256_v57 = vsel %vm1252_vm9, %v1239_v61, %v994_v58 }
 0x17a   : > { %v1072_v43 = vpop.permute.xlu1 %1071  ;;  %v1056_v1 = vpop.permute.xlu0 %1055 }
 0x17b   : > { %v1280_v37 = vsel %vm1269_vm10, %v1263_v24, %v1072_v43  ;;  %v1272_v41 = vsel %vm1269_vm10, %v1255_v44, %v1056_v1 }
 0x17c   : > { %1786 = vmatprep.mubr.msk.f32.mxu0 %vm1299_vm11, %v1272_v41  ;;  %1798 = vmatprep.mubr.msk.f32.mxu1 %vm1299_vm11, %v1280_v37 }
 0x17e   : > { %v570_v55 = vpop.permute.xlu1 %569  ;;  %v554_v46 = vpop.permute.xlu0 %553 }
 0x17f   : > { %v1149_v12 = vsel %vm1133_vm2, %v1132_v36, %v570_v55  ;;  %v1141_v50 = vsel %vm1133_vm2, %v1124_v3, %v554_v46  ;;  %v1247_v36 = vsel %vm1235_vm8, %v1230_v9, %v2767_v17 }
 0x180   : > { %v1264_v19 = vsel %vm1252_vm9, %v1247_v36, %v1010_v56 }
 0x182   : > { %v632_v14 = vpop.permute.xlu1 %631  ;;  %v616_v28 = vpop.permute.xlu0 %615 }
 0x183   : > { %v1165_v8 = vsel %vm1150_vm3, %v1148_v49, %v632_v14  ;;  %v1157_v5 = vsel %vm1150_vm3, %v1140_v13, %v616_v28 }
 0x186   : > { %v822_v52 = vpop.permute.xlu1 %821  ;;  %v806_v11 = vpop.permute.xlu0 %805 }
 0x187   : > { %v1215_v18 = vsel %vm1201_vm6, %v1198_v51, %v822_v52  ;;  %v1207_v31 = vsel %vm1201_vm6, %v1190_v26, %v806_v11 }
 0x18a   : > { %v884_v35 = vpop.permute.xlu1 %883  ;;  %v868_v42 = vpop.permute.xlu0 %867 }
 0x18b   : > { %v1231_v16 = vsel %vm1218_vm7, %v2799_v48, %v884_v35  ;;  %v1223_v44 = vsel %vm1218_vm7, %v2802_v15, %v868_v42 }
 0x18e   : > { %v1074_v10 = vpop.permute.xlu1 %1073  ;;  %v1058_v21 = vpop.permute.xlu0 %1057 }
 0x18f   : > { %v1281_v47 = vsel %vm1269_vm10, %v1264_v19, %v1074_v10  ;;  %v1273_v30 = vsel %vm1269_vm10, %v1256_v57, %v1058_v21 }
 0x190   : > { %1787 = vmatmul.mubr.msk.f32.gmra.mrb[2].mxu0 %vm1299_vm11, %v1273_v30  ;;  %1799 = vmatmul.mubr.msk.f32.gmra.mrb[2].mxu1 %vm1299_vm11, %v1281_v47 }
 0x192   : > { %v634_v4 = vpop.permute.xlu1 %633  ;;  %v618_v29 = vpop.permute.xlu0 %617 }
 0x193   : > { %v2850_v45 = vsel %vm1150_vm3, %v1149_v12, %v634_v4  ;;  %v2853_v6 = vsel %vm1150_vm3, %v1141_v50, %v618_v29 }
 0x196   : > { %v696_v17 = vpop.permute.xlu1 %695  ;;  %v680_v7 = vpop.permute.xlu0 %679 }
 0x197   : > { %v1182_v53 = vsel %vm1167_vm4, %v1165_v8, %v696_v17  ;;  %v1174_v27 = vsel %vm1167_vm4, %v1157_v5, %v680_v7 }
 0x19a   : > { %v886_v38 = vpop.permute.xlu1 %885  ;;  %v870_v49 = vpop.permute.xlu0 %869 }
 0x19b   : > { %v1232_v55 = vsel %vm1218_vm7, %v1215_v18, %v886_v38  ;;  %v1224_v46 = vsel %vm1218_vm7, %v1207_v31, %v870_v49 }
 0x19e   : > { %v948_v13 = vpop.permute.xlu1 %947  ;;  %v932_v39 = vpop.permute.xlu0 %931 }
 0x19f   : > { %v1248_v24 = vsel %vm1235_vm8, %v1231_v16, %v948_v13  ;;  %v1240_v43 = vsel %vm1235_vm8, %v1223_v44, %v932_v39  ;;  %v1730_v16 = vld [vmem:[%s2970_s2] ss:$0 sm:$0xff] }
 0x1a2   : > { %v698_v22 = vpop.permute.xlu1 %697  ;;  %v682_v23 = vpop.permute.xlu0 %681 }
 0x1a3   : > { %v1183_v17 = vsel %vm1167_vm4, %v2850_v45, %v698_v22  ;;  %v1175_v7 = vsel %vm1167_vm4, %v2853_v6, %v682_v23 }
 0x1a6   : > { %v760_v20 = vpop.permute.xlu1 %759  ;;  %v744_v51 = vpop.permute.xlu0 %743 }
 0x1a7   : > { %v1199_v19 = vsel %vm1184_vm5, %v1182_v53, %v760_v20  ;;  %v1191_v57 = vsel %vm1184_vm5, %v1174_v27, %v744_v51 }
 0x1aa   : > { %v950_v26 = vpop.permute.xlu1 %949  ;;  %v934_v63 = vpop.permute.xlu0 %933 }
 0x1ab   : > { %v1249_v12 = vsel %vm1235_vm8, %v1232_v55, %v950_v26  ;;  %v1241_v50 = vsel %vm1235_vm8, %v1224_v46, %v934_v63 }
 0x1ae   : > { %v1012_v2 = vpop.permute.xlu1 %1011  ;;  %v996_v40 = vpop.permute.xlu0 %995 }
 0x1af   : > { %v1265_v1 = vsel %vm1252_vm9, %v1248_v24, %v1012_v2  ;;  %v1257_v37 = vsel %vm1252_vm9, %v1240_v43, %v996_v40 }
 0x1b2   : > { %v762_v34 = vpop.permute.xlu1 %761  ;;  %v746_v56 = vpop.permute.xlu0 %745 }
 0x1b3   : > { %v1200_v38 = vsel %vm1184_vm5, %v1183_v17, %v762_v34  ;;  %v1192_v49 = vsel %vm1184_vm5, %v1175_v7, %v746_v56 }
 0x1b6   : > { %v824_v58 = vpop.permute.xlu1 %823  ;;  %v808_v54 = vpop.permute.xlu0 %807 }
 0x1b7   : > { %v1216_v47 = vsel %vm1201_vm6, %v1199_v19, %v824_v58  ;;  %v1208_v30 = vsel %vm1201_vm6, %v1191_v57, %v808_v54 }
 0x1ba   : > { %v1014_v59 = vpop.permute.xlu1 %1013  ;;  %v998_v0 = vpop.permute.xlu0 %997 }
 0x1bb   : > { %v1266_v14 = vsel %vm1252_vm9, %v1249_v12, %v1014_v59  ;;  %v1258_v28 = vsel %vm1252_vm9, %v1241_v50, %v998_v0 }
 0x1be   : > { %v1076_v41 = vpop.permute.xlu1 %1075  ;;  %v1060_v32 = vpop.permute.xlu0 %1059 }
 0x1bf   : > { %v1282_v60 = vsel %vm1269_vm10, %v1265_v1, %v1076_v41  ;;  %v1274_v25 = vsel %vm1269_vm10, %v1257_v37, %v1060_v32 }
 0x1c0   : > { %1789 = vmatprep.mubr.msk.f32.mxu0 %vm1299_vm11, %v1274_v25  ;;  %1801 = vmatprep.mubr.msk.f32.mxu1 %vm1299_vm11, %v1282_v60 }
 0x1c2   : > { %v826_v48 = vpop.permute.xlu1 %825  ;;  %v810_v15 = vpop.permute.xlu0 %809 }
 0x1c3   : > { %v1217_v26 = vsel %vm1201_vm6, %v1200_v38, %v826_v48  ;;  %v1209_v45 = vsel %vm1201_vm6, %v1192_v49, %v810_v15 }
 0x1c6   : > { %v888_v33 = vpop.permute.xlu1 %887  ;;  %v872_v3 = vpop.permute.xlu0 %871 }
 0x1c7   : > { %v1233_v4 = vsel %vm1218_vm7, %v1216_v47, %v888_v33  ;;  %v1225_v29 = vsel %vm1218_vm7, %v1208_v30, %v872_v3 }
 0x1ca   : > { %v1078_v8 = vpop.permute.xlu1 %1077  ;;  %v1062_v5 = vpop.permute.xlu0 %1061 }
 0x1cb   : > { %v1283_v52 = vsel %vm1269_vm10, %v1266_v14, %v1078_v8  ;;  %v1275_v11 = vsel %vm1269_vm10, %v1258_v28, %v1062_v5 }
 0x1cc   : > { %1790 = vmatmul.mubr.msk.f32.gmra.mrb[4].mxu0 %vm1299_vm11, %v1275_v11  ;;  %1802 = vmatmul.mubr.msk.f32.gmra.mrb[4].mxu1 %vm1299_vm11, %v1283_v52 }
 0x1ce   : > { %v890_v18 = vpop.permute.xlu1 %889  ;;  %v874_v31 = vpop.permute.xlu0 %873 }
 0x1cf   : > { %v1234_v23 = vsel %vm1218_vm7, %v1217_v26, %v890_v18  ;;  %v1226_v63 = vsel %vm1218_vm7, %v1209_v45, %v874_v31 }
 0x1d2   : > { %v952_v35 = vpop.permute.xlu1 %951  ;;  %v936_v42 = vpop.permute.xlu0 %935 }
 0x1d3   : > { %v1250_v53 = vsel %vm1235_vm8, %v1233_v4, %v952_v35  ;;  %v1242_v27 = vsel %vm1235_vm8, %v1225_v29, %v936_v42 }
 0x1d6   : > { %v954_v9 = vpop.permute.xlu1 %953  ;;  %v938_v62 = vpop.permute.xlu0 %937 }
 0x1d7   : > { %v1251_v2 = vsel %vm1235_vm8, %v1234_v23, %v954_v9  ;;  %v1243_v40 = vsel %vm1235_vm8, %v1226_v63, %v938_v62 }
 0x1da   : > { %v1016_v61 = vpop.permute.xlu1 %1015  ;;  %v1000_v36 = vpop.permute.xlu0 %999 }
 0x1db   : > { %v1267_v13 = vsel %vm1252_vm9, %v1250_v53, %v1016_v61  ;;  %v1259_v39 = vsel %vm1252_vm9, %v1242_v27, %v1000_v36 }
 0x1de   : > { %v1018_v10 = vpop.permute.xlu1 %1017  ;;  %v1002_v21 = vpop.permute.xlu0 %1001 }
 0x1df   : > { %v1268_v34 = vsel %vm1252_vm9, %v1251_v2, %v1018_v10  ;;  %v1260_v56 = vsel %vm1252_vm9, %v1243_v40, %v1002_v21 }
 0x1e2   : > { %v1080_v20 = vpop.permute.xlu1 %1079  ;;  %v1064_v51 = vpop.permute.xlu0 %1063 }
 0x1e3   : > { %v1284_v6 = vsel %vm1269_vm10, %v1267_v13, %v1080_v20  ;;  %v1276_v22 = vsel %vm1269_vm10, %v1259_v39, %v1064_v51 }
 0x1e4   : > { %1792 = vmatprep.mubr.msk.f32.mxu0 %vm1299_vm11, %v1276_v22  ;;  %1804 = vmatprep.mubr.msk.f32.mxu1 %vm1299_vm11, %v1284_v6 }
 0x1e6   : > { %v1082_v58 = vpop.permute.xlu1 %1081  ;;  %v1066_v54 = vpop.permute.xlu0 %1065 }
 0x1e7   : > { %v1285_v59 = vsel %vm1269_vm10, %v1268_v34, %v1082_v58  ;;  %v1277_v0 = vsel %vm1269_vm10, %v1260_v56, %v1066_v54 }
 0x1e8   : > { %1793 = vmatmul.mubr.msk.f32.gmra.mrb[6].mxu0 %vm1299_vm11, %v1277_v0  ;;  %1805 = vmatmul.mubr.msk.f32.gmra.mrb[6].mxu1 %vm1299_vm11, %v1285_v59 }
 0x218   : > { %v1785_v44 = vpop.f32.mrb[0].mxu0  ;;  %v1797_v24 = vpop.f32.mrb[0].mxu1 }
 0x219   : > { %v1420_v43 = vadd.f32 %v1785_v44, %v1730_v16  ;;  %v1460_v1 = vadd.f32 %v1797_v24, %v1730_v16  ;;  %v1414_v37 = vpop.f32.mrb[1].mxu0  ;;  %v1454_v41 = vpop.f32.mrb[1].mxu1 }
 0x21a   : > { %v1415_v32 = vadd.f32 %v1730_v16, %v1414_v37  ;;  %v1455_v60 = vadd.f32 %v1730_v16, %v1454_v41 }
 0x21b   : > { %1494 = vst.msk [vmem:[%s2919_s6 + $0x8] sm:$0xff] %vm1116_vm1, %v1420_v43  ;;  %1502 = vst.msk [vmem:[%s2919_s6 + $0x48] sm:$0xff] %vm1116_vm1, %v1460_v1 }
 0x21c   : > { %1493 = vst.msk [vmem:[%s2919_s6] sm:$0xff] %vm1116_vm1, %v1415_v32  ;;  %1501 = vst.msk [vmem:[%s2919_s6 + $0x40] sm:$0xff] %vm1116_vm1, %v1455_v60 }
 0x263   : > { %v1788_v25 = vpop.f32.mrb[2].mxu0  ;;  %v1800_v48 = vpop.f32.mrb[2].mxu1 }
 0x264   : > { %v1430_v15 = vadd.f32 %v1788_v25, %v1730_v16  ;;  %v1470_v33 = vadd.f32 %v1800_v48, %v1730_v16  ;;  %v1424_v3 = vpop.f32.mrb[3].mxu0  ;;  %v1464_v55 = vpop.f32.mrb[3].mxu1 }
 0x265   : > { %v1425_v46 = vadd.f32 %v1730_v16, %v1424_v3  ;;  %v1465_v12 = vadd.f32 %v1730_v16, %v1464_v55 }
 0x266   : > { %1496 = vst.msk [vmem:[%s2919_s6 + $0x18] sm:$0xff] %vm1116_vm1, %v1430_v15  ;;  %1504 = vst.msk [vmem:[%s2919_s6 + $0x58] sm:$0xff] %vm1116_vm1, %v1470_v33 }
 0x267   : > { %1495 = vst.msk [vmem:[%s2919_s6 + $0x10] sm:$0xff] %vm1116_vm1, %v1425_v46  ;;  %1503 = vst.msk [vmem:[%s2919_s6 + $0x50] sm:$0xff] %vm1116_vm1, %v1465_v12 }
 0x29f   : > { %v1791_v50 = vpop.f32.mrb[4].mxu0  ;;  %v1803_v14 = vpop.f32.mrb[4].mxu1 }
 0x2a0   : > { %v1440_v28 = vadd.f32 %v1791_v50, %v1730_v16  ;;  %v1480_v8 = vadd.f32 %v1803_v14, %v1730_v16  ;;  %v1434_v5 = vpop.f32.mrb[5].mxu0  ;;  %v1474_v52 = vpop.f32.mrb[5].mxu1 }
 0x2a1   : > { %v1435_v11 = vadd.f32 %v1730_v16, %v1434_v5  ;;  %v1475_v18 = vadd.f32 %v1730_v16, %v1474_v52 }
 0x2a2   : > { %1498 = vst.msk [vmem:[%s2919_s6 + $0x28] sm:$0xff] %vm1116_vm1, %v1440_v28  ;;  %1506 = vst.msk [vmem:[%s2919_s6 + $0x68] sm:$0xff] %vm1116_vm1, %v1480_v8 }
 0x2a3   : > { %1497 = vst.msk [vmem:[%s2919_s6 + $0x20] sm:$0xff] %vm1116_vm1, %v1435_v11  ;;  %1505 = vst.msk [vmem:[%s2919_s6 + $0x60] sm:$0xff] %vm1116_vm1, %v1475_v18 }
 0x2bb   : > { %v1794_v31 = vpop.f32.mrb[6].mxu0  ;;  %v1806_v35 = vpop.f32.mrb[6].mxu1 }
 0x2bc   : > { %v1450_v42 = vadd.f32 %v1794_v31, %v1730_v16  ;;  %v1490_v9 = vadd.f32 %v1806_v35, %v1730_v16  ;;  %v1444_v62 = vpop.f32.mrb[7].mxu0  ;;  %v1484_v61 = vpop.f32.mrb[7].mxu1 }
 0x2bd   : > { %v1445_v36 = vadd.f32 %v1730_v16, %v1444_v62  ;;  %v1485_v19 = vadd.f32 %v1730_v16, %v1484_v61 }
 0x2be   : > { %1500 = vst.msk [vmem:[%s2919_s6 + $0x38] sm:$0xff] %vm1116_vm1, %v1450_v42  ;;  %1508 = vst.msk [vmem:[%s2919_s6 + $0x78] sm:$0xff] %vm1116_vm1, %v1490_v9 }
 0x2bf   : > { %1499 = vst.msk [vmem:[%s2919_s6 + $0x30] sm:$0xff] %vm1116_vm1, %v1445_v36  ;;  %1507 = vst.msk [vmem:[%s2919_s6 + $0x70] sm:$0xff] %vm1116_vm1, %v1485_v19 }
 0x2c0 PF: > { %s13_s16 = sadd.s32 1, %s1915_s16   ;;  %s3045_s12 = smov %s1907_s14 }
 0x2c1   : > { %p10_p7 = scmp.ge.s32.totalorder %s13_s16, 6   ;;  %s3046_s13 = smov %s1911_s15 }
 0x2c2   : > { %s3047_s14 = smov %s3050_s17  ;;  %s3048_s15 = smov %s3054_s18 }
 0x2c3   :  { %12 = sbr.rel (!%p10_p7) target bundleno = 3 (0x3), region = 65 }

</bundles_post_ra>
